<compile_context>
chip_gen: v7x
topology: tpu7x:2x2x1
jax: 0.10.0
libtpu: 0.0.40
codegen_flags: <defaults>
</compile_context>

<pallas_src>
import functools

import jax
import jax.numpy as jnp
from jax import lax
from jax.experimental import pallas as pl
from jax.experimental.pallas import tpu as pltpu


# ----------------------------- in-kernel helpers -----------------------------

def _layernorm(x, g, b, eps):
    """LayerNorm over the last axis, f32 math (matches torch eps/behaviour)."""
    mean = jnp.mean(x, axis=-1, keepdims=True)
    var = jnp.mean(jnp.square(x - mean), axis=-1, keepdims=True)
    return (x - mean) * lax.rsqrt(var + eps) * g + b


def _mha_with_proj(q, k, v, pw_ref, pb_ref, *, num_heads, scale, cd):
    """Multi-head attention with the output projection folded in per head.

    q: (N, C) f32, k/v: (M, C) f32, pw_ref: (C, C), pb_ref: (1, C).
    Per-head slicing uses static lane slices; concat-over-heads + proj matmul
    is rewritten as  sum_h (softmax(q_h k_h^T) v_h) @ W_proj[h*D:(h+1)*D, :],
    which is mathematically identical and keeps everything as 2-D dots.
    """
    _, C = q.shape
    D = C // num_heads
    acc = None
    for h in range(num_heads):
        lo, hi = h * D, (h + 1) * D
        qh = q[:, lo:hi].astype(cd)                     # (N, D)
        kh = k[:, lo:hi].astype(cd)                     # (M, D)
        vh = v[:, lo:hi].astype(cd)                     # (M, D)
        s = lax.dot_general(qh, kh, (((1,), (1,)), ((), ())),
                            preferred_element_type=jnp.float32) * scale
        s = s - jnp.max(s, axis=-1, keepdims=True)      # f32 softmax
        e = jnp.exp(s)
        p = e / jnp.sum(e, axis=-1, keepdims=True)
        oh = jnp.dot(p.astype(cd), vh, preferred_element_type=jnp.float32)
        wh = pw_ref[lo:hi, :].astype(cd)                # (D, C) static ref slice
        contrib = jnp.dot(oh.astype(cd), wh, preferred_element_type=jnp.float32)
        acc = contrib if acc is None else acc + contrib
    return acc + pb_ref[...].astype(jnp.float32)


# ------------------------------- fused kernels -------------------------------

def _fused_attn_sr_kernel(*refs, num_heads, scale, eps, cd, qkv_bias):
    """Per-batch fused forward for sr_ratio > 1 (2D or 3D patch-merge conv)."""
    if qkv_bias:
        (x_ref, patch_ref, qw_ref, qb_ref, kvw_ref, kvb_ref, srw_ref, srb_ref,
         ng_ref, nb_ref, pw_ref, pb_ref, o_ref) = refs
    else:
        (x_ref, patch_ref, qw_ref, kvw_ref, srw_ref, srb_ref,
         ng_ref, nb_ref, pw_ref, pb_ref, o_ref) = refs
        qb_ref = kvb_ref = None

    x = x_ref[0]                                        # (N, C) tokens, f32
    C = x.shape[-1]

    # q projection (bf16 operands, f32 accumulate).
    q = jnp.dot(x.astype(cd), qw_ref[...].astype(cd),
                preferred_element_type=jnp.float32)
    if qb_ref is not None:
        q = q + qb_ref[...].astype(jnp.float32)

    # Spatial-reduction Conv (kernel=stride=sr) as a patch matmul:
    #   patches (M-1, C*k^d) @ w_sr (C*k^d, C) + b   (numerically identical).
    xr = jnp.dot(patch_ref[0].astype(cd), srw_ref[...].astype(cd),
                 preferred_element_type=jnp.float32)
    xr = xr + srb_ref[...].astype(jnp.float32)

    # Token order inside the kernel is [reduced tokens, class token]: attention
    # output is invariant to a joint permutation of key/value tokens (LayerNorm
    # and the kv projection are per-token), and this order keeps the sublane
    # concat contiguous (many rows, then 1).
    x_ = jnp.concatenate([xr, x[0:1, :]], axis=0)       # (M, C)

    x_ = _layernorm(x_, ng_ref[...].astype(jnp.float32),
                    nb_ref[...].astype(jnp.float32), eps)

    kv = jnp.dot(x_.astype(cd), kvw_ref[...].astype(cd),
                 preferred_element_type=jnp.float32)
    if kvb_ref is not None:
        kv = kv + kvb_ref[...].astype(jnp.float32)
    k = kv[:, :C]
    v = kv[:, C:]

    out = _mha_with_proj(q, k, v, pw_ref, pb_ref,
                         num_heads=num_heads, scale=scale, cd=cd)
    o_ref[0] = out.astype(o_ref.dtype)


def _fused_attn_kernel(*refs, num_heads, scale, cd, qkv_bias):
    """Per-batch fused forward for sr_ratio == 1 (merged (C,3C) qkv matmul)."""
    if qkv_bias:
        x_ref, qkvw_ref, qkvb_ref, pw_ref, pb_ref, o_ref = refs
    else:
        x_ref, qkvw_ref, pw_ref, pb_ref, o_ref = refs
        qkvb_ref = None

    x = x_ref[0]                                        # (N, C)
    C = x.shape[-1]
    qkv = jnp.dot(x.astype(cd), qkvw_ref[...].astype(cd),
                  preferred_element_type=jnp.float32)
    if qkvb_ref is not None:
        qkv = qkv + qkvb_ref[...].astype(jnp.float32)
    q = qkv[:, :C]
    k = qkv[:, C:2 * C]
    v = qkv[:, 2 * C:]
    out = _mha_with_proj(q, k, v, pw_ref, pb_ref,
                         num_heads=num_heads, scale=scale, cd=cd)
    o_ref[0] = out.astype(o_ref.dtype)


# --------------------------- patch extraction (XLA) ---------------------------

def _extract_patches(x, dims, modal_type, sr_ratio):
    """Non-overlapping k^d patches flattened in (C, k...) order (layout only)."""
    B, _, C = x.shape
    k = sr_ratio
    if modal_type == "2D":
        Hs, Ws = int(dims[0]), int(dims[1])
        xs = x[:, 1:, :].reshape(B, Hs, Ws, C)
        pchs = xs.reshape(B, Hs // k, k, Ws // k, k, C)
        pchs = pchs.transpose(0, 1, 3, 5, 2, 4)
        return pchs.reshape(B, (Hs // k) * (Ws // k), C * k * k)
    elif modal_type == "3D":
        Ds, Hs, Ws = int(dims[0]), int(dims[1]), int(dims[2])
        xs = x[:, 1:, :].reshape(B, Ds, Hs, Ws, C)
        pchs = xs.reshape(B, Ds // k, k, Hs // k, k, Ws // k, k, C)
        pchs = pchs.transpose(0, 1, 3, 5, 7, 2, 4, 6)
        return pchs.reshape(B, (Ds // k) * (Hs // k) * (Ws // k), C * k * k * k)
    raise NotImplementedError(f"unsupported modal_type {modal_type!r}")


# ------------------------- parameter construction ---------------------------

def init_attention_params(key, dim, sr_ratio, qkv_bias=False, modal_type="MM"):
    ks = jax.random.split(key, 10)
    s = 0.02
    p = {
        # nn.Linear weights stored directly as (in, out); synthetic init.
        "q_w": jax.random.normal(ks[0], (dim, dim), jnp.float32) * s,
        "kv_w": jax.random.normal(ks[1], (dim, 2 * dim), jnp.float32) * s,
        "proj_w": jax.random.normal(ks[2], (dim, dim), jnp.float32) * s,
        "proj_b": jax.random.normal(ks[3], (dim,), jnp.float32) * s,
    }
    if qkv_bias:
        p["q_b"] = jax.random.normal(ks[4], (dim,), jnp.float32) * s
        p["kv_b"] = jax.random.normal(ks[5], (2 * dim,), jnp.float32) * s
    if sr_ratio > 1:
        if modal_type in ("2D", "MM"):
            # Conv2d(dim, dim, k, stride=k): weight (Cout, Cin, kh, kw)
            p["sr2D_w"] = jax.random.normal(
                ks[6], (dim, dim, sr_ratio, sr_ratio), jnp.float32) * s
            p["sr2D_b"] = jax.random.normal(ks[7], (dim,), jnp.float32) * s
        if modal_type in ("3D", "MM"):
            # Conv3d(dim, dim, k, stride=k): weight (Cout, Cin, kd, kh, kw)
            p["sr3D_w"] = jax.random.normal(
                ks[8], (dim, dim, sr_ratio, sr_ratio, sr_ratio), jnp.float32) * s
            p["sr3D_b"] = jax.random.normal(ks[9], (dim,), jnp.float32) * s
        p["norm_g"] = jnp.ones((dim,), jnp.float32)
        p["norm_b"] = jnp.zeros((dim,), jnp.float32)
    return p


# ------------------------------ forward wrapper ------------------------------

def attention_forward(p, x, dims, modal_type, *, num_heads, sr_ratio,
                      mxu_dtype=jnp.bfloat16):
    """Fused Pallas forward.  x: (B, N, C) with a leading class token."""
    B, N, C = x.shape
    D = C // num_heads
    scale = float(D) ** -0.5
    qkv_bias = "q_b" in p
    per_batch = lambda b: (b, 0, 0)
    full2d = lambda b: (0, 0)
    cparams = pltpu.CompilerParams(dimension_semantics=("parallel",))

    if sr_ratio > 1:
        if modal_type not in ("2D", "3D"):
            # TODO(synk): modal_type 'MM' at forward time is undefined in the
            # reference module too (neither conv branch is taken).
            raise NotImplementedError("forward modal_type must be '2D' or '3D'")
        # Patch extraction (pure layout plumbing, done once in XLA): patches
        # flattened in (C, k...) order so they contract against the conv
        # weight reshaped as (Cout, Cin*k^d)^T.
        patches = _extract_patches(x, dims, modal_type, sr_ratio)
        _, Ms, Ckk = patches.shape
        wkey, bkey = (("sr2D_w", "sr2D_b") if modal_type == "2D"
                      else ("sr3D_w", "sr3D_b"))
        w_sr = p[wkey].reshape(C, Ckk).T                 # (C*k^d, Cout)

        args = [x, patches, p["q_w"]]
        in_specs = [pl.BlockSpec((1, N, C), per_batch),
                    pl.BlockSpec((1, Ms, Ckk), per_batch),
                    pl.BlockSpec((C, C), full2d)]
        if qkv_bias:
            args.append(p["q_b"].reshape(1, C))
            in_specs.append(pl.BlockSpec((1, C), full2d))
        args.append(p["kv_w"])
        in_specs.append(pl.BlockSpec((C, 2 * C), full2d))
        if qkv_bias:
            args.append(p["kv_b"].reshape(1, 2 * C))
            in_specs.append(pl.BlockSpec((1, 2 * C), full2d))
        args += [w_sr, p[bkey].reshape(1, C),
                 p["norm_g"].reshape(1, C), p["norm_b"].reshape(1, C),
                 p["proj_w"], p["proj_b"].reshape(1, C)]
        in_specs += [pl.BlockSpec((Ckk, C), full2d),
                     pl.BlockSpec((1, C), full2d),
                     pl.BlockSpec((1, C), full2d),
                     pl.BlockSpec((1, C), full2d),
                     pl.BlockSpec((C, C), full2d),
                     pl.BlockSpec((1, C), full2d)]
        kernel = functools.partial(_fused_attn_sr_kernel, num_heads=num_heads,
                                   scale=scale, eps=1e-5, cd=mxu_dtype,
                                   qkv_bias=qkv_bias)
    else:
        # Merge q and kv projections into a single (C, 3C) matmul.
        qkv_w = jnp.concatenate([p["q_w"], p["kv_w"]], axis=1)
        args = [x, qkv_w]
        in_specs = [pl.BlockSpec((1, N, C), per_batch),
                    pl.BlockSpec((C, 3 * C), full2d)]
        if qkv_bias:
            args.append(jnp.concatenate([p["q_b"], p["kv_b"]]).reshape(1, 3 * C))
            in_specs.append(pl.BlockSpec((1, 3 * C), full2d))
        args += [p["proj_w"], p["proj_b"].reshape(1, C)]
        in_specs += [pl.BlockSpec((C, C), full2d),
                     pl.BlockSpec((1, C), full2d)]
        kernel = functools.partial(_fused_attn_kernel, num_heads=num_heads,
                                   scale=scale, cd=mxu_dtype, qkv_bias=qkv_bias)

    return pl.pallas_call(
        kernel,
        out_shape=jax.ShapeDtypeStruct((B, N, C), x.dtype),
        grid=(B,),
        in_specs=in_specs,
        out_specs=pl.BlockSpec((1, N, C), per_batch),
        compiler_params=cparams,
    )(*args)


# ------------------------------ pure-JAX reference ---------------------------

def attention_reference(p, x, dims, modal_type, *, num_heads, sr_ratio):
    """f32 reference mirroring the PyTorch module (conv via lax.conv)."""
    B, N, C = x.shape
    D = C // num_heads
    scale = float(D) ** -0.5
    q = x @ p["q_w"] + (p["q_b"] if "q_b" in p else 0.0)
    if sr_ratio > 1:
        if modal_type == "2D":
            Hs, Ws = int(dims[0]), int(dims[1])
            x_sp = x[:, 1:, :].reshape(B, Hs, Ws, C).transpose(0, 3, 1, 2)
            xr = lax.conv_general_dilated(
                x_sp, p["sr2D_w"], window_strides=(sr_ratio, sr_ratio),
                padding="VALID", dimension_numbers=("NCHW", "OIHW", "NCHW"))
            xr = xr + p["sr2D_b"].reshape(1, C, 1, 1)
        else:  # "3D"
            Ds, Hs, Ws = int(dims[0]), int(dims[1]), int(dims[2])
            x_sp = x[:, 1:, :].reshape(B, Ds, Hs, Ws, C).transpose(0, 4, 1, 2, 3)
            xr = lax.conv_general_dilated(
                x_sp, p["sr3D_w"],
                window_strides=(sr_ratio, sr_ratio, sr_ratio),
                padding="VALID", dimension_numbers=("NCDHW", "OIDHW", "NCDHW"))
            xr = xr + p["sr3D_b"].reshape(1, C, 1, 1, 1)
        xr = xr.reshape(B, C, -1).transpose(0, 2, 1)
        x_ = jnp.concatenate([x[:, 0:1, :], xr], axis=1)
        mean = jnp.mean(x_, axis=-1, keepdims=True)
        var = jnp.mean(jnp.square(x_ - mean), axis=-1, keepdims=True)
        x_ = (x_ - mean) / jnp.sqrt(var + 1e-5) * p["norm_g"] + p["norm_b"]
    else:
        x_ = x
    kv = x_ @ p["kv_w"] + (p["kv_b"] if "kv_b" in p else 0.0)
    M = x_.shape[1]
    qh = q.reshape(B, N, num_heads, D).transpose(0, 2, 1, 3)
    kh = kv[..., :C].reshape(B, M, num_heads, D).transpose(0, 2, 1, 3)
    vh = kv[..., C:].reshape(B, M, num_heads, D).transpose(0, 2, 1, 3)
    s = jnp.einsum("bhnd,bhmd->bhnm", qh, kh) * scale
    a = jax.nn.softmax(s, axis=-1)
    o = jnp.einsum("bhnm,bhmd->bhnd", a, vh)
    o = o.transpose(0, 2, 1, 3).reshape(B, N, C)
    return o @ p["proj_w"] + p["proj_b"]


# ------------------------------------ main -----------------------------------

if __name__ == "__main__":
    key = jax.random.PRNGKey(0)
    dim, num_heads = 32, 4
    B = 2

    kp, kx = jax.random.split(key)

    # --- 2D spatial-reduction path (sr_ratio=2, modal_type='2D', no qkv bias) ---
    Hs, Ws = 8, 8
    N2 = 1 + Hs * Ws
    x2 = jax.random.normal(kx, (B, N2, dim), jnp.float32)
    params_2d = init_attention_params(kp, dim, sr_ratio=2, qkv_bias=False,
                                      modal_type="2D")
    fwd_2d = jax.jit(lambda p_, x_: attention_forward(
        p_, x_, (Hs, Ws), "2D", num_heads=num_heads, sr_ratio=2))
    out_2d = jax.block_until_ready(fwd_2d(params_2d, x2))
    ref_2d = attention_reference(params_2d, x2, (Hs, Ws), "2D",
                                 num_heads=num_heads, sr_ratio=2)
    assert out_2d.shape == (B, N2, dim)
    assert bool(jnp.all(jnp.isfinite(out_2d)))
    err_2d = float(jnp.max(jnp.abs(out_2d - ref_2d)))
    assert err_2d < 5e-3, f"2D sr path max abs err {err_2d}"

    # --- 3D spatial-reduction path (sr_ratio=2, modal_type='3D', no qkv bias) ---
    Ds3, Hs3, Ws3 = 4, 4, 4
    N3 = 1 + Ds3 * Hs3 * Ws3
    x3 = jax.random.normal(jax.random.fold_in(kx, 1), (B, N3, dim), jnp.float32)
    params_3d = init_attention_params(jax.random.fold_in(kp, 1), dim,
                                      sr_ratio=2, qkv_bias=False,
                                      modal_type="3D")
    fwd_3d = jax.jit(lambda p_, x_: attention_forward(
        p_, x_, (Ds3, Hs3, Ws3), "3D", num_heads=num_heads, sr_ratio=2))
    out_3d = jax.block_until_ready(fwd_3d(params_3d, x3))
    ref_3d = attention_reference(params_3d, x3, (Ds3, Hs3, Ws3), "3D",
                                 num_heads=num_heads, sr_ratio=2)
    assert out_3d.shape == (B, N3, dim)
    assert bool(jnp.all(jnp.isfinite(out_3d)))
    err_3d = float(jnp.max(jnp.abs(out_3d - ref_3d)))
    assert err_3d < 5e-3, f"3D sr path max abs err {err_3d}"

    # --- no-reduction path (sr_ratio=1, qkv_bias=True, merged qkv matmul) ---
    params_nr = init_attention_params(kp, dim, sr_ratio=1, qkv_bias=True)
    fwd_nr = jax.jit(lambda p_, x_: attention_forward(
        p_, x_, (Hs, Ws), "2D", num_heads=num_heads, sr_ratio=1))
    out_nr = jax.block_until_ready(fwd_nr(params_nr, x2))
    ref_nr = attention_reference(params_nr, x2, (Hs, Ws), "2D",
                                 num_heads=num_heads, sr_ratio=1)
    assert out_nr.shape == (B, N2, dim)
    assert bool(jnp.all(jnp.isfinite(out_nr)))
    err_nr = float(jnp.max(jnp.abs(out_nr - ref_nr)))
    assert err_nr < 5e-3, f"no-sr path max abs err {err_nr}"

    print("KERNEL_OK")
</pallas_src>

<mosaic_0001>
module attributes {stable_mosaic.version = 11 : i64} {
  func.func @_fused_attn_sr_kernel(%arg0: i32, %arg1: memref<1x65x32xf32, #tpu.memory_space<vmem>>, %arg2: memref<1x16x128xf32, #tpu.memory_space<vmem>>, %arg3: memref<32x32xf32, #tpu.memory_space<vmem>>, %arg4: memref<32x64xf32, #tpu.memory_space<vmem>>, %arg5: memref<128x32xf32, #tpu.memory_space<vmem>>, %arg6: memref<1x32xf32, #tpu.memory_space<vmem>>, %arg7: memref<1x32xf32, #tpu.memory_space<vmem>>, %arg8: memref<1x32xf32, #tpu.memory_space<vmem>>, %arg9: memref<32x32xf32, #tpu.memory_space<vmem>>, %arg10: memref<1x32xf32, #tpu.memory_space<vmem>>, %arg11: memref<1x65x32xf32, #tpu.memory_space<vmem>>) attributes {dimension_semantics = [#tpu.dimension_semantics<parallel>], iteration_bounds = array<i64: 2>, scalar_prefetch = 0 : i64, scratch_operands = 0 : i64, tpu.core_type = #tpu.core_type<tc>, window_params = [{transform_indices = @transform_0, window_bounds = array<i64: 1, 65, 32>}, {transform_indices = @transform_1, window_bounds = array<i64: 1, 16, 128>}, {pipeline_mode = #tpu.pipeline_mode<synchronous>, transform_indices = @transform_2, window_bounds = array<i64: 32, 32>}, {pipeline_mode = #tpu.pipeline_mode<synchronous>, transform_indices = @transform_3, window_bounds = array<i64: 32, 64>}, {pipeline_mode = #tpu.pipeline_mode<synchronous>, transform_indices = @transform_4, window_bounds = array<i64: 128, 32>}, {pipeline_mode = #tpu.pipeline_mode<synchronous>, transform_indices = @transform_5, window_bounds = array<i64: 1, 32>}, {pipeline_mode = #tpu.pipeline_mode<synchronous>, transform_indices = @transform_6, window_bounds = array<i64: 1, 32>}, {pipeline_mode = #tpu.pipeline_mode<synchronous>, transform_indices = @transform_7, window_bounds = array<i64: 1, 32>}, {pipeline_mode = #tpu.pipeline_mode<synchronous>, transform_indices = @transform_8, window_bounds = array<i64: 32, 32>}, {pipeline_mode = #tpu.pipeline_mode<synchronous>, transform_indices = @transform_9, window_bounds = array<i64: 1, 32>}, {transform_indices = @transform_10, window_bounds = array<i64: 1, 65, 32>}]} {
    %c0 = arith.constant 0 : index
    %c0_0 = arith.constant 0 : index
    %c0_1 = arith.constant 0 : index
    %0 = vector.load %arg1[%c0, %c0_0, %c0_1] : memref<1x65x32xf32, #tpu.memory_space<vmem>>, vector<1x65x32xf32>
    %1 = vector.shape_cast %0 : vector<1x65x32xf32> to vector<65x32xf32>
    %2 = arith.truncf %1 : vector<65x32xf32> to vector<65x32xbf16>
    %c0_2 = arith.constant 0 : index
    %c0_3 = arith.constant 0 : index
    %3 = vector.load %arg3[%c0_2, %c0_3] : memref<32x32xf32, #tpu.memory_space<vmem>>, vector<32x32xf32>
    %4 = arith.truncf %3 : vector<32x32xf32> to vector<32x32xbf16>
    %cst = arith.constant dense<0.000000e+00> : vector<65x32xf32>
    %5 = tpu.matmul %2, %4, %cst {dimension_numbers = #tpu.dot_dimension_numbers<[1], [0], [0], [1], [0, 0, 1, 1], [], []>} : vector<65x32xbf16>, vector<32x32xbf16>, vector<65x32xf32> -> vector<65x32xf32>
    %c0_4 = arith.constant 0 : index
    %c0_5 = arith.constant 0 : index
    %c0_6 = arith.constant 0 : index
    %6 = vector.load %arg2[%c0_4, %c0_5, %c0_6] : memref<1x16x128xf32, #tpu.memory_space<vmem>>, vector<1x16x128xf32>
    %7 = vector.shape_cast %6 : vector<1x16x128xf32> to vector<16x128xf32>
    %8 = arith.truncf %7 : vector<16x128xf32> to vector<16x128xbf16>
    %c0_7 = arith.constant 0 : index
    %c0_8 = arith.constant 0 : index
    %9 = vector.load %arg5[%c0_7, %c0_8] : memref<128x32xf32, #tpu.memory_space<vmem>>, vector<128x32xf32>
    %10 = arith.truncf %9 : vector<128x32xf32> to vector<128x32xbf16>
    %cst_9 = arith.constant dense<0.000000e+00> : vector<16x32xf32>
    %11 = tpu.matmul %8, %10, %cst_9 {dimension_numbers = #tpu.dot_dimension_numbers<[1], [0], [0], [1], [0, 0, 1, 1], [], []>} : vector<16x128xbf16>, vector<128x32xbf16>, vector<16x32xf32> -> vector<16x32xf32>
    %c0_10 = arith.constant 0 : index
    %c0_11 = arith.constant 0 : index
    %12 = vector.load %arg6[%c0_10, %c0_11] : memref<1x32xf32, #tpu.memory_space<vmem>>, vector<1x32xf32>
    %13 = vector.broadcast %12 : vector<1x32xf32> to vector<16x32xf32>
    %14 = arith.addf %11, %13 : vector<16x32xf32>
    %15 = vector.extract_strided_slice %1 {offsets = [0, 0], sizes = [1, 32], strides = [1, 1]} : vector<65x32xf32> to vector<1x32xf32>
    %16 = tpu.concatenate %14, %15 in 0 : vector<16x32xf32>, vector<1x32xf32> -> vector<17x32xf32>
    %c0_12 = arith.constant 0 : index
    %c0_13 = arith.constant 0 : index
    %17 = vector.load %arg7[%c0_12, %c0_13] : memref<1x32xf32, #tpu.memory_space<vmem>>, vector<1x32xf32>
    %c0_14 = arith.constant 0 : index
    %c0_15 = arith.constant 0 : index
    %18 = vector.load %arg8[%c0_14, %c0_15] : memref<1x32xf32, #tpu.memory_space<vmem>>, vector<1x32xf32>
    %cst_16 = arith.constant dense<0.000000e+00> : vector<17xf32>
    %19 = vector.multi_reduction <add>, %16, %cst_16 [1] : vector<17x32xf32> to vector<17xf32>
    %20 = vector.shape_cast %19 : vector<17xf32> to vector<17x1xf32>
    %cst_17 = arith.constant 3.200000e+01 : f32
    %21 = vector.broadcast %cst_17 : f32 to vector<17x1xf32>
    %22 = arith.divf %20, %21 : vector<17x1xf32>
    %23 = vector.broadcast %22 : vector<17x1xf32> to vector<17x32xf32>
    %24 = arith.subf %16, %23 : vector<17x32xf32>
    %25 = arith.mulf %24, %24 : vector<17x32xf32>
    %cst_18 = arith.constant dense<0.000000e+00> : vector<17xf32>
    %26 = vector.multi_reduction <add>, %25, %cst_18 [1] : vector<17x32xf32> to vector<17xf32>
    %27 = vector.shape_cast %26 : vector<17xf32> to vector<17x1xf32>
    %cst_19 = arith.constant 3.200000e+01 : f32
    %28 = vector.broadcast %cst_19 : f32 to vector<17x1xf32>
    %29 = arith.divf %27, %28 : vector<17x1xf32>
    %30 = vector.broadcast %22 : vector<17x1xf32> to vector<17x32xf32>
    %31 = arith.subf %16, %30 : vector<17x32xf32>
    %cst_20 = arith.constant 9.99999974E-6 : f32
    %32 = vector.broadcast %cst_20 : f32 to vector<17x1xf32>
    %33 = arith.addf %29, %32 : vector<17x1xf32>
    %34 = math.rsqrt %33 : vector<17x1xf32>
    %35 = vector.broadcast %34 : vector<17x1xf32> to vector<17x32xf32>
    %36 = arith.mulf %31, %35 : vector<17x32xf32>
    %37 = vector.broadcast %17 : vector<1x32xf32> to vector<17x32xf32>
    %38 = arith.mulf %36, %37 : vector<17x32xf32>
    %39 = vector.broadcast %18 : vector<1x32xf32> to vector<17x32xf32>
    %40 = arith.addf %38, %39 : vector<17x32xf32>
    %41 = arith.truncf %40 : vector<17x32xf32> to vector<17x32xbf16>
    %c0_21 = arith.constant 0 : index
    %c0_22 = arith.constant 0 : index
    %42 = vector.load %arg4[%c0_21, %c0_22] : memref<32x64xf32, #tpu.memory_space<vmem>>, vector<32x64xf32>
    %43 = arith.truncf %42 : vector<32x64xf32> to vector<32x64xbf16>
    %cst_23 = arith.constant dense<0.000000e+00> : vector<17x64xf32>
    %44 = tpu.matmul %41, %43, %cst_23 {dimension_numbers = #tpu.dot_dimension_numbers<[1], [0], [0], [1], [0, 0, 1, 1], [], []>} : vector<17x32xbf16>, vector<32x64xbf16>, vector<17x64xf32> -> vector<17x64xf32>
    %45 = vector.extract_strided_slice %44 {offsets = [0, 0], sizes = [17, 32], strides = [1, 1]} : vector<17x64xf32> to vector<17x32xf32>
    %46 = vector.extract_strided_slice %44 {offsets = [0, 32], sizes = [17, 32], strides = [1, 1]} : vector<17x64xf32> to vector<17x32xf32>
    %47 = vector.extract_strided_slice %5 {offsets = [0, 0], sizes = [65, 8], strides = [1, 1]} : vector<65x32xf32> to vector<65x8xf32>
    %48 = arith.truncf %47 : vector<65x8xf32> to vector<65x8xbf16>
    %49 = vector.extract_strided_slice %45 {offsets = [0, 0], sizes = [17, 8], strides = [1, 1]} : vector<17x32xf32> to vector<17x8xf32>
    %50 = arith.truncf %49 : vector<17x8xf32> to vector<17x8xbf16>
    %51 = vector.extract_strided_slice %46 {offsets = [0, 0], sizes = [17, 8], strides = [1, 1]} : vector<17x32xf32> to vector<17x8xf32>
    %52 = arith.truncf %51 : vector<17x8xf32> to vector<17x8xbf16>
    %cst_24 = arith.constant dense<0.000000e+00> : vector<65x17xf32>
    %53 = tpu.matmul %48, %50, %cst_24 {dimension_numbers = #tpu.dot_dimension_numbers<[1], [1], [0], [0], [0, 0, 1, 0], [], []>} : vector<65x8xbf16>, vector<17x8xbf16>, vector<65x17xf32> -> vector<65x17xf32>
    %cst_25 = arith.constant 0.353553385 : f32
    %54 = vector.broadcast %cst_25 : f32 to vector<65x17xf32>
    %55 = arith.mulf %53, %54 : vector<65x17xf32>
    %cst_26 = arith.constant dense<0xFF800000> : vector<65xf32>
    %56 = vector.multi_reduction <maximumf>, %55, %cst_26 [1] : vector<65x17xf32> to vector<65xf32>
    %57 = vector.shape_cast %56 : vector<65xf32> to vector<65x1xf32>
    %58 = vector.broadcast %57 : vector<65x1xf32> to vector<65x17xf32>
    %59 = arith.subf %55, %58 : vector<65x17xf32>
    %60 = math.exp %59 : vector<65x17xf32>
    %cst_27 = arith.constant dense<0.000000e+00> : vector<65xf32>
    %61 = vector.multi_reduction <add>, %60, %cst_27 [1] : vector<65x17xf32> to vector<65xf32>
    %62 = vector.shape_cast %61 : vector<65xf32> to vector<65x1xf32>
    %63 = vector.broadcast %62 : vector<65x1xf32> to vector<65x17xf32>
    %64 = arith.divf %60, %63 : vector<65x17xf32>
    %65 = arith.truncf %64 : vector<65x17xf32> to vector<65x17xbf16>
    %cst_28 = arith.constant dense<0.000000e+00> : vector<65x8xf32>
    %66 = tpu.matmul %65, %52, %cst_28 {dimension_numbers = #tpu.dot_dimension_numbers<[1], [0], [0], [1], [0, 0, 1, 1], [], []>} : vector<65x17xbf16>, vector<17x8xbf16>, vector<65x8xf32> -> vector<65x8xf32>
    %c0_29 = arith.constant 0 : index
    %c0_30 = arith.constant 0 : index
    %67 = vector.load %arg9[%c0_29, %c0_30] : memref<32x32xf32, #tpu.memory_space<vmem>>, vector<8x32xf32>
    %68 = arith.truncf %67 : vector<8x32xf32> to vector<8x32xbf16>
    %69 = arith.truncf %66 : vector<65x8xf32> to vector<65x8xbf16>
    %cst_31 = arith.constant dense<0.000000e+00> : vector<65x32xf32>
    %70 = tpu.matmul %69, %68, %cst_31 {dimension_numbers = #tpu.dot_dimension_numbers<[1], [0], [0], [1], [0, 0, 1, 1], [], []>} : vector<65x8xbf16>, vector<8x32xbf16>, vector<65x32xf32> -> vector<65x32xf32>
    %71 = vector.extract_strided_slice %5 {offsets = [0, 8], sizes = [65, 8], strides = [1, 1]} : vector<65x32xf32> to vector<65x8xf32>
    %72 = arith.truncf %71 : vector<65x8xf32> to vector<65x8xbf16>
    %73 = vector.extract_strided_slice %45 {offsets = [0, 8], sizes = [17, 8], strides = [1, 1]} : vector<17x32xf32> to vector<17x8xf32>
    %74 = arith.truncf %73 : vector<17x8xf32> to vector<17x8xbf16>
    %75 = vector.extract_strided_slice %46 {offsets = [0, 8], sizes = [17, 8], strides = [1, 1]} : vector<17x32xf32> to vector<17x8xf32>
    %76 = arith.truncf %75 : vector<17x8xf32> to vector<17x8xbf16>
    %cst_32 = arith.constant dense<0.000000e+00> : vector<65x17xf32>
    %77 = tpu.matmul %72, %74, %cst_32 {dimension_numbers = #tpu.dot_dimension_numbers<[1], [1], [0], [0], [0, 0, 1, 0], [], []>} : vector<65x8xbf16>, vector<17x8xbf16>, vector<65x17xf32> -> vector<65x17xf32>
    %cst_33 = arith.constant 0.353553385 : f32
    %78 = vector.broadcast %cst_33 : f32 to vector<65x17xf32>
    %79 = arith.mulf %77, %78 : vector<65x17xf32>
    %cst_34 = arith.constant dense<0xFF800000> : vector<65xf32>
    %80 = vector.multi_reduction <maximumf>, %79, %cst_34 [1] : vector<65x17xf32> to vector<65xf32>
    %81 = vector.shape_cast %80 : vector<65xf32> to vector<65x1xf32>
    %82 = vector.broadcast %81 : vector<65x1xf32> to vector<65x17xf32>
    %83 = arith.subf %79, %82 : vector<65x17xf32>
    %84 = math.exp %83 : vector<65x17xf32>
    %cst_35 = arith.constant dense<0.000000e+00> : vector<65xf32>
    %85 = vector.multi_reduction <add>, %84, %cst_35 [1] : vector<65x17xf32> to vector<65xf32>
    %86 = vector.shape_cast %85 : vector<65xf32> to vector<65x1xf32>
    %87 = vector.broadcast %86 : vector<65x1xf32> to vector<65x17xf32>
    %88 = arith.divf %84, %87 : vector<65x17xf32>
    %89 = arith.truncf %88 : vector<65x17xf32> to vector<65x17xbf16>
    %cst_36 = arith.constant dense<0.000000e+00> : vector<65x8xf32>
    %90 = tpu.matmul %89, %76, %cst_36 {dimension_numbers = #tpu.dot_dimension_numbers<[1], [0], [0], [1], [0, 0, 1, 1], [], []>} : vector<65x17xbf16>, vector<17x8xbf16>, vector<65x8xf32> -> vector<65x8xf32>
    %c8 = arith.constant 8 : index
    %c0_37 = arith.constant 0 : index
    %91 = vector.load %arg9[%c8, %c0_37] : memref<32x32xf32, #tpu.memory_space<vmem>>, vector<8x32xf32>
    %92 = arith.truncf %91 : vector<8x32xf32> to vector<8x32xbf16>
    %93 = arith.truncf %90 : vector<65x8xf32> to vector<65x8xbf16>
    %cst_38 = arith.constant dense<0.000000e+00> : vector<65x32xf32>
    %94 = tpu.matmul %93, %92, %cst_38 {dimension_numbers = #tpu.dot_dimension_numbers<[1], [0], [0], [1], [0, 0, 1, 1], [], []>} : vector<65x8xbf16>, vector<8x32xbf16>, vector<65x32xf32> -> vector<65x32xf32>
    %95 = arith.addf %70, %94 : vector<65x32xf32>
    %96 = vector.extract_strided_slice %5 {offsets = [0, 16], sizes = [65, 8], strides = [1, 1]} : vector<65x32xf32> to vector<65x8xf32>
    %97 = arith.truncf %96 : vector<65x8xf32> to vector<65x8xbf16>
    %98 = vector.extract_strided_slice %45 {offsets = [0, 16], sizes = [17, 8], strides = [1, 1]} : vector<17x32xf32> to vector<17x8xf32>
    %99 = arith.truncf %98 : vector<17x8xf32> to vector<17x8xbf16>
    %100 = vector.extract_strided_slice %46 {offsets = [0, 16], sizes = [17, 8], strides = [1, 1]} : vector<17x32xf32> to vector<17x8xf32>
    %101 = arith.truncf %100 : vector<17x8xf32> to vector<17x8xbf16>
    %cst_39 = arith.constant dense<0.000000e+00> : vector<65x17xf32>
    %102 = tpu.matmul %97, %99, %cst_39 {dimension_numbers = #tpu.dot_dimension_numbers<[1], [1], [0], [0], [0, 0, 1, 0], [], []>} : vector<65x8xbf16>, vector<17x8xbf16>, vector<65x17xf32> -> vector<65x17xf32>
    %cst_40 = arith.constant 0.353553385 : f32
    %103 = vector.broadcast %cst_40 : f32 to vector<65x17xf32>
    %104 = arith.mulf %102, %103 : vector<65x17xf32>
    %cst_41 = arith.constant dense<0xFF800000> : vector<65xf32>
    %105 = vector.multi_reduction <maximumf>, %104, %cst_41 [1] : vector<65x17xf32> to vector<65xf32>
    %106 = vector.shape_cast %105 : vector<65xf32> to vector<65x1xf32>
    %107 = vector.broadcast %106 : vector<65x1xf32> to vector<65x17xf32>
    %108 = arith.subf %104, %107 : vector<65x17xf32>
    %109 = math.exp %108 : vector<65x17xf32>
    %cst_42 = arith.constant dense<0.000000e+00> : vector<65xf32>
    %110 = vector.multi_reduction <add>, %109, %cst_42 [1] : vector<65x17xf32> to vector<65xf32>
    %111 = vector.shape_cast %110 : vector<65xf32> to vector<65x1xf32>
    %112 = vector.broadcast %111 : vector<65x1xf32> to vector<65x17xf32>
    %113 = arith.divf %109, %112 : vector<65x17xf32>
    %114 = arith.truncf %113 : vector<65x17xf32> to vector<65x17xbf16>
    %cst_43 = arith.constant dense<0.000000e+00> : vector<65x8xf32>
    %115 = tpu.matmul %114, %101, %cst_43 {dimension_numbers = #tpu.dot_dimension_numbers<[1], [0], [0], [1], [0, 0, 1, 1], [], []>} : vector<65x17xbf16>, vector<17x8xbf16>, vector<65x8xf32> -> vector<65x8xf32>
    %c16 = arith.constant 16 : index
    %c0_44 = arith.constant 0 : index
    %116 = vector.load %arg9[%c16, %c0_44] : memref<32x32xf32, #tpu.memory_space<vmem>>, vector<8x32xf32>
    %117 = arith.truncf %116 : vector<8x32xf32> to vector<8x32xbf16>
    %118 = arith.truncf %115 : vector<65x8xf32> to vector<65x8xbf16>
    %cst_45 = arith.constant dense<0.000000e+00> : vector<65x32xf32>
    %119 = tpu.matmul %118, %117, %cst_45 {dimension_numbers = #tpu.dot_dimension_numbers<[1], [0], [0], [1], [0, 0, 1, 1], [], []>} : vector<65x8xbf16>, vector<8x32xbf16>, vector<65x32xf32> -> vector<65x32xf32>
    %120 = arith.addf %95, %119 : vector<65x32xf32>
    %121 = vector.extract_strided_slice %5 {offsets = [0, 24], sizes = [65, 8], strides = [1, 1]} : vector<65x32xf32> to vector<65x8xf32>
    %122 = arith.truncf %121 : vector<65x8xf32> to vector<65x8xbf16>
    %123 = vector.extract_strided_slice %45 {offsets = [0, 24], sizes = [17, 8], strides = [1, 1]} : vector<17x32xf32> to vector<17x8xf32>
    %124 = arith.truncf %123 : vector<17x8xf32> to vector<17x8xbf16>
    %125 = vector.extract_strided_slice %46 {offsets = [0, 24], sizes = [17, 8], strides = [1, 1]} : vector<17x32xf32> to vector<17x8xf32>
    %126 = arith.truncf %125 : vector<17x8xf32> to vector<17x8xbf16>
    %cst_46 = arith.constant dense<0.000000e+00> : vector<65x17xf32>
    %127 = tpu.matmul %122, %124, %cst_46 {dimension_numbers = #tpu.dot_dimension_numbers<[1], [1], [0], [0], [0, 0, 1, 0], [], []>} : vector<65x8xbf16>, vector<17x8xbf16>, vector<65x17xf32> -> vector<65x17xf32>
    %cst_47 = arith.constant 0.353553385 : f32
    %128 = vector.broadcast %cst_47 : f32 to vector<65x17xf32>
    %129 = arith.mulf %127, %128 : vector<65x17xf32>
    %cst_48 = arith.constant dense<0xFF800000> : vector<65xf32>
    %130 = vector.multi_reduction <maximumf>, %129, %cst_48 [1] : vector<65x17xf32> to vector<65xf32>
    %131 = vector.shape_cast %130 : vector<65xf32> to vector<65x1xf32>
    %132 = vector.broadcast %131 : vector<65x1xf32> to vector<65x17xf32>
    %133 = arith.subf %129, %132 : vector<65x17xf32>
    %134 = math.exp %133 : vector<65x17xf32>
    %cst_49 = arith.constant dense<0.000000e+00> : vector<65xf32>
    %135 = vector.multi_reduction <add>, %134, %cst_49 [1] : vector<65x17xf32> to vector<65xf32>
    %136 = vector.shape_cast %135 : vector<65xf32> to vector<65x1xf32>
    %137 = vector.broadcast %136 : vector<65x1xf32> to vector<65x17xf32>
    %138 = arith.divf %134, %137 : vector<65x17xf32>
    %139 = arith.truncf %138 : vector<65x17xf32> to vector<65x17xbf16>
    %cst_50 = arith.constant dense<0.000000e+00> : vector<65x8xf32>
    %140 = tpu.matmul %139, %126, %cst_50 {dimension_numbers = #tpu.dot_dimension_numbers<[1], [0], [0], [1], [0, 0, 1, 1], [], []>} : vector<65x17xbf16>, vector<17x8xbf16>, vector<65x8xf32> -> vector<65x8xf32>
    %c24 = arith.constant 24 : index
    %c0_51 = arith.constant 0 : index
    %141 = vector.load %arg9[%c24, %c0_51] : memref<32x32xf32, #tpu.memory_space<vmem>>, vector<8x32xf32>
    %142 = arith.truncf %141 : vector<8x32xf32> to vector<8x32xbf16>
    %143 = arith.truncf %140 : vector<65x8xf32> to vector<65x8xbf16>
    %cst_52 = arith.constant dense<0.000000e+00> : vector<65x32xf32>
    %144 = tpu.matmul %143, %142, %cst_52 {dimension_numbers = #tpu.dot_dimension_numbers<[1], [0], [0], [1], [0, 0, 1, 1], [], []>} : vector<65x8xbf16>, vector<8x32xbf16>, vector<65x32xf32> -> vector<65x32xf32>
    %145 = arith.addf %120, %144 : vector<65x32xf32>
    %c0_53 = arith.constant 0 : index
    %c0_54 = arith.constant 0 : index
    %146 = vector.load %arg10[%c0_53, %c0_54] : memref<1x32xf32, #tpu.memory_space<vmem>>, vector<1x32xf32>
    %147 = vector.broadcast %146 : vector<1x32xf32> to vector<65x32xf32>
    %148 = arith.addf %145, %147 : vector<65x32xf32>
    %c0_55 = arith.constant 0 : index
    %c0_56 = arith.constant 0 : index
    %c0_57 = arith.constant 0 : index
    %149 = vector.load %arg11[%c0_55, %c0_56, %c0_57] : memref<1x65x32xf32, #tpu.memory_space<vmem>>, vector<1x65x32xf32>
    %150 = vector.shape_cast %149 : vector<1x65x32xf32> to vector<65x32xf32>
    %151 = vector.shape_cast %148 : vector<65x32xf32> to vector<1x65x32xf32>
    tpu.vector_store %arg11[%c0_55, %c0_56, %c0_57], %151 {strides = array<i32>} : memref<1x65x32xf32, #tpu.memory_space<vmem>>, vector<1x65x32xf32>,
    return
  }
  func.func @transform_0(%arg0: i32) -> (i32, i32, i32) {
    %c0_i32 = arith.constant 0 : i32
    %c0_i32_0 = arith.constant 0 : i32
    %c0_i32_1 = arith.constant 0 : i32
    return %arg0, %c0_i32, %c0_i32_0 : i32, i32, i32
  }
  func.func @transform_1(%arg0: i32) -> (i32, i32, i32) {
    %c0_i32 = arith.constant 0 : i32
    %c0_i32_0 = arith.constant 0 : i32
    %c0_i32_1 = arith.constant 0 : i32
    return %arg0, %c0_i32, %c0_i32_0 : i32, i32, i32
  }
  func.func @transform_2(%arg0: i32) -> (i32, i32) {
    %c0_i32 = arith.constant 0 : i32
    %c0_i32_0 = arith.constant 0 : i32
    %c0_i32_1 = arith.constant 0 : i32
    return %c0_i32, %c0_i32_0 : i32, i32
  }
  func.func @transform_3(%arg0: i32) -> (i32, i32) {
    %c0_i32 = arith.constant 0 : i32
    %c0_i32_0 = arith.constant 0 : i32
    %c0_i32_1 = arith.constant 0 : i32
    return %c0_i32, %c0_i32_0 : i32, i32
  }
  func.func @transform_4(%arg0: i32) -> (i32, i32) {
    %c0_i32 = arith.constant 0 : i32
    %c0_i32_0 = arith.constant 0 : i32
    %c0_i32_1 = arith.constant 0 : i32
    return %c0_i32, %c0_i32_0 : i32, i32
  }
  func.func @transform_5(%arg0: i32) -> (i32, i32) {
    %c0_i32 = arith.constant 0 : i32
    %c0_i32_0 = arith.constant 0 : i32
    %c0_i32_1 = arith.constant 0 : i32
    return %c0_i32, %c0_i32_0 : i32, i32
  }
  func.func @transform_6(%arg0: i32) -> (i32, i32) {
    %c0_i32 = arith.constant 0 : i32
    %c0_i32_0 = arith.constant 0 : i32
    %c0_i32_1 = arith.constant 0 : i32
    return %c0_i32, %c0_i32_0 : i32, i32
  }
  func.func @transform_7(%arg0: i32) -> (i32, i32) {
    %c0_i32 = arith.constant 0 : i32
    %c0_i32_0 = arith.constant 0 : i32
    %c0_i32_1 = arith.constant 0 : i32
    return %c0_i32, %c0_i32_0 : i32, i32
  }
  func.func @transform_8(%arg0: i32) -> (i32, i32) {
    %c0_i32 = arith.constant 0 : i32
    %c0_i32_0 = arith.constant 0 : i32
    %c0_i32_1 = arith.constant 0 : i32
    return %c0_i32, %c0_i32_0 : i32, i32
  }
  func.func @transform_9(%arg0: i32) -> (i32, i32) {
    %c0_i32 = arith.constant 0 : i32
    %c0_i32_0 = arith.constant 0 : i32
    %c0_i32_1 = arith.constant 0 : i32
    return %c0_i32, %c0_i32_0 : i32, i32
  }
  func.func @transform_10(%arg0: i32) -> (i32, i32, i32) {
    %c0_i32 = arith.constant 0 : i32
    %c0_i32_0 = arith.constant 0 : i32
    %c0_i32_1 = arith.constant 0 : i32
    return %arg0, %c0_i32, %c0_i32_0 : i32, i32, i32
  }
}

</mosaic_0001>

<bundles_post_ra>
// kernel: _lambda_.1
= control target key start
LH: loop header
LB: loop body
LE: loop exit
PB: predicated region body
PF: predicated region fallthrough
CT: control target
= control target key end

     0   :  { %s3209_s13 = smov 0   ;;  %s4044_s0 = inlined_call_operand.vmem [shape: f32[2,65,32], index: 0, kind: input, shape index: {}]   ;;  %s4045_s1 = inlined_call_operand.vmem [shape: f32[2,16,128], index: 1, kind: input, shape index: {}]   ;;  %s4046_s2 = inlined_call_operand.vmem [shape: f32[32,32], index: 2, kind: input, shape index: {}]   ;;  %s4047_s3 = inlined_call_operand.vmem [shape: f32[32,64], index: 3, kind: input, shape index: {}]   ;;  %s4048_s4 = inlined_call_operand.vmem [shape: f32[128,32], index: 4, kind: input, shape index: {}]   ;;  %s4049_s5 = inlined_call_operand.vmem [shape: f32[1,32], index: 5, kind: input, shape index: {}]   ;;  %s4050_s6 = inlined_call_operand.vmem [shape: f32[1,32], index: 6, kind: input, shape index: {}]   ;;  %s4051_s7 = inlined_call_operand.vmem [shape: f32[1,32], index: 7, kind: input, shape index: {}]   ;;  %s4052_s8 = inlined_call_operand.vmem [shape: f32[32,32], index: 8, kind: input, shape index: {}]   ;;  %s4053_s9 = inlined_call_operand.vmem [shape: f32[1,32], index: 9, kind: input, shape index: {}]   ;;  %s4054_s10 = inlined_call_operand.vmem [shape: f32[2,65,32], index: 10, kind: output, shape index: {}]  }
   0x1 LB: > { %s2452_s14 = sadd.s32 4294967295, %s3142_s13   ;;  %p2456_p0 = scmp.ge.s32.totalorder %s3142_s13, 1  ;;  %s3142_s13 = sphi %s3209_s13, %s20_s13  }
   0x2   : > { %p322_p1 = scmp.lt.s32.totalorder %s3142_s13, 3 }
   0x4   : > { %p323_p2 = pnand %p2456_p0, %p322_p1 }
   0x5   : > { %v492_v0 = vld [vmem:[%s4048_s4] sm:$0xff] (!%p323_p2)  ;;  %v493_v1 = vld [vmem:[%s4048_s4 + $0x8] sm:$0xff] (!%p323_p2)  ;;  %v494_v2 = vld [vmem:[%s4048_s4 + $0x10] sm:$0xff] (!%p323_p2)  ;;  %v3144_v3 = vmov (!%p323_p2), 0.0   ;;  %vm3145_vm0 = vmmov (!%p323_p2), 0   ;;  %p365_p3 = scmp.lt.s32.totalorder (!%p323_p2), %s2452_s14, 1 }
   0x6   : > { %326 = sbr.rel (%p323_p2) target bundleno = 3391 (0xd3f), region = 60  ;;  %2659 = vmatprep.subr.bf16.mxu1 (!%p323_p2), %v3144_v3  ;;  %v508_v4 = vpack.c.bf16 (!%p323_p2), %v493_v1, %v492_v0  ;;  %v495_v5 = vld [vmem:[%s4048_s4 + $0x18] sm:$0xff] (!%p323_p2)  ;;  %2675 = vmatprep.mubr.msk.bf16.mxu1 (!%p323_p2), %vm3145_vm0, %v3144_v3  ;;  %v496_v7 = vld [vmem:[%s4048_s4 + $0x20] sm:$0xff] (!%p323_p2)  ;;  %v497_v8 = vld [vmem:[%s4048_s4 + $0x28] sm:$0xff] (!%p323_p2)  ;;  %vm572_vm1 = vcmask (!%p323_p2), 253952   ;;  %vm401_vm2 = vcmask (!%p323_p2), 261120  }
   0x7   : > { %2635 = vmatprep.subr.bf16.mxu0 (!%p323_p2), %v3144_v3  ;;  %2639 = vmatprep.mubr.msk.bf16.mxu0 (!%p323_p2), %vm3145_vm0, %v3144_v3  ;;  %v509_v6 = vpack.c.bf16 (!%p323_p2), %v495_v5, %v494_v2  ;;  %v510_v9 = vpack.c.bf16 (!%p323_p2), %v497_v8, %v496_v7  ;;  %v498_v10 = vld [vmem:[%s4048_s4 + $0x30] sm:$0xff] (!%p323_p2)  ;;  %v499_v11 = vld [vmem:[%s4048_s4 + $0x38] sm:$0xff] (!%p323_p2)  ;;  %v500_v13 = vld [vmem:[%s4048_s4 + $0x40] sm:$0xff] (!%p323_p2)  ;;  %s3146_s24 = smov (!%p323_p2), 120   ;;  %vm694_vm3 = vcmask (!%p323_p2), 64512   ;;  %vm797_vm4 = vcmask (!%p323_p2), 138240  }
   0x8   : > { %2660 = vmatpush3.bf16.msra.mxu1 (!%p323_p2), %v508_v4  ;;  %v511_v12 = vpack.c.bf16 (!%p323_p2), %v499_v11, %v498_v10  ;;  %v501_v14 = vld [vmem:[%s4048_s4 + $0x48] sm:$0xff] (!%p323_p2)  ;;  %v502_v16 = vld [vmem:[%s4048_s4 + $0x50] sm:$0xff] (!%p323_p2)  ;;  %v503_v17 = vld [vmem:[%s4048_s4 + $0x58] sm:$0xff] (!%p323_p2)  ;;  %vm822_vm5 = vcmask (!%p323_p2), 131072   ;;  %vm925_vm6 = vcmask (!%p323_p2), 1040384   ;;  %s3149_s26 = smov (!%p323_p2), 88  }
   0x9   : > { %2661 = vmatprep.subr.bf16.mxu1 (!%p323_p2), %v3144_v3  ;;  %v512_v15 = vpack.c.bf16 (!%p323_p2), %v501_v14, %v500_v13  ;;  %v513_v18 = vpack.c.bf16 (!%p323_p2), %v503_v17, %v502_v16  ;;  %v504_v19 = vld [vmem:[%s4048_s4 + $0x60] sm:$0xff] (!%p323_p2)  ;;  %v505_v20 = vld [vmem:[%s4048_s4 + $0x68] sm:$0xff] (!%p323_p2)  ;;  %v506_v22 = vld [vmem:[%s4048_s4 + $0x70] sm:$0xff] (!%p323_p2)  ;;  %s3150_s27 = smov (!%p323_p2), 112   ;;  %vm1352_vm7 = vcmask (!%p323_p2), 1043456   ;;  %s3152_s16 = smov (!%p323_p2), 104  }
   0xa   : > { %v514_v21 = vpack.c.bf16 (!%p323_p2), %v505_v20, %v504_v19  ;;  %v507_v23 = vld [vmem:[%s4048_s4 + $0x78] sm:$0xff] (!%p323_p2)  ;;  %v2466_v30 = vld [vmem:[%s4049_s5] ss:$0 sm:$0xff] (!%p323_p2)  ;;  %v628_v55 = vld [vmem:[%s4047_s3 + $0x8] sm:$0xff] (!%p323_p2)  ;;  %s3153_s20 = smov (!%p323_p2), 72  }
   0xb   : > { %v515_v24 = vpack.c.bf16 (!%p323_p2), %v507_v23, %v506_v22  ;;  %v627_v54 = vld [vmem:[%s4047_s3] sm:$0xff] (!%p323_p2)  ;;  %v629_v57 = vld [vmem:[%s4047_s3 + $0x10] sm:$0xff] (!%p323_p2)  ;;  %v630_v58 = vld [vmem:[%s4047_s3 + $0x18] sm:$0xff] (!%p323_p2) }
   0xc   : > { %2662 = vmatpush3.bf16.msra.mxu1 (!%p323_p2), %v509_v6  ;;  %v631_v56 = vpack.c.bf16 (!%p323_p2), %v628_v55, %v627_v54  ;;  %v632_v59 = vpack.c.bf16 (!%p323_p2), %v630_v58, %v629_v57  ;;  %v395_v60 = vld [vmem:[%s4046_s2] sm:$0xff] (!%p323_p2)  ;;  %v396_v61 = vld [vmem:[%s4046_s2 + $0x8] sm:$0xff] (!%p323_p2)  ;;  %v397_v62 = vld [vmem:[%s4046_s2 + $0x10] sm:$0xff] (!%p323_p2) }
   0xd   : > { %2663 = vmatprep.subr.bf16.mxu1 %v3144_v3  ;;  %s4056_s14 = smov (!%p365_p3, %s2452_s14), 1  ;;  %v399_v63 = vpack.c.bf16 %v396_v61, %v395_v60  ;;  %v398_v0 = vld [vmem:[%s4046_s2 + $0x18] sm:$0xff] }
   0xe   : > { %s2534_s25 = sshll.u32 %s4056_s14, 4  ;;  %s2967_s15 = smul.u32 72, %s4056_s14  ;;  %v400_v2 = vpack.c.bf16 %v398_v0, %v397_v62 }
   0xf   : > { %s374_s12 = scalar_lea.vmem %s4045_s1, %s2534_s25  ;;  %2636 = vmatpush3.bf16.msra.mxu0 %v399_v63  ;;  %s3147_s25 = smov 96  }
  0x10   : > { %2664 = vmatpush3.bf16.msra.mxu1 %v510_v9  ;;  %v489_v25 = vld [vmem:[%s374_s12] sm:$0xff]  ;;  %v490_v26 = vld [vmem:[%s374_s12 + $0x8] sm:$0xff]  ;;  %s3294_s18 = scalar_lea.vmem %s4044_s0, %s2967_s15  ;;  %2637 = vmatprep.subr.bf16.mxu0 %v3144_v3  ;;  %s3151_s12 = smov 80  }
  0x11   : > { %2665 = vmatprep.subr.bf16.mxu1 %v3144_v3  ;;  %v491_v27 = vpack.c.bf16 %v490_v26, %v489_v25  ;;  %v381_v28 = vld [vmem:[%s3294_s18] sm:$0xff]  ;;  %v382_v1 = vld [vmem:[%s3294_s18 + $0x8] sm:$0xff]  ;;  %v383_v5 = vld [vmem:[%s3294_s18 + $0x10] sm:$0xff] }
  0x12   : > { %v573_v29 = vsel %vm572_vm1, %v381_v28, 0.0  ;;  %v390_v4 = vpack.c.bf16 %v382_v1, %v381_v28  ;;  %v384_v6 = vld [vmem:[%s3294_s18 + $0x18] sm:$0xff]  ;;  %v385_v8 = vld [vmem:[%s3294_s18 + $0x20] sm:$0xff]  ;;  %v386_v9 = vld [vmem:[%s3294_s18 + $0x28] sm:$0xff] }
  0x13   : > { %574 = vadd.xlane.f32.xlu1 %v573_v29  ;;  %2638 = vmatpush3.bf16.msra.mxu0 %v400_v2  ;;  %v391_v7 = vpack.c.bf16 %v384_v6, %v383_v5  ;;  %v392_v10 = vpack.c.bf16 %v386_v9, %v385_v8  ;;  %v387_v11 = vld [vmem:[%s3294_s18 + $0x30] sm:$0xff]  ;;  %v389_v14 = vld [vmem:[%s3294_s18 + $0x40] sm:$0x1] }
  0x14   : > { %2666 = vmatpush3.bf16.msra.mxu1 %v511_v12  ;;  %2687 = vmatprep.subr.bf16.mxu0 %v3144_v3  ;;  %v388_v12 = vld [vmem:[%s3294_s18 + $0x38] sm:$0xff] }
  0x15   : > { %2667 = vmatprep.subr.bf16.mxu1 %v3144_v3  ;;  %v393_v13 = vpack.c.bf16 %v388_v12, %v387_v11 }
  0x16   : > { %2640 = vmatmul.mubr.msk.bf16.vlgmr.msra.gmra.mrb[0].mxu0 %vm401_vm2, %v390_v4 }
  0x17   : > { %2643 = vmatprep.mubr.msk.bf16.mxu0 %vm3145_vm0, %v3144_v3 }
  0x18   : > { %2668 = vmatpush3.bf16.msra.mxu1 %v512_v15  ;;  %v394_v15 = vpack.c.bf16 %v389_v14, %v389_v14 }
  0x19   : > { %2669 = vmatprep.subr.bf16.mxu1 %v3144_v3 }
  0x1c   : > { %2670 = vmatpush3.bf16.msra.mxu1 %v513_v18 }
  0x1d   : > { %2671 = vmatprep.subr.bf16.mxu1 %v3144_v3 }
  0x1e   : > { %2644 = vmatmul.mubr.msk.bf16.gmra.mrb[4].mxu0 %vm401_vm2, %v391_v7 }
  0x1f   : > { %2647 = vmatprep.mubr.msk.bf16.mxu0 %vm3145_vm0, %v3144_v3 }
  0x20   : > { %2672 = vmatpush3.bf16.msra.mxu1 %v514_v21 }
  0x21   : > { %2673 = vmatprep.subr.bf16.mxu1 %v3144_v3 }
  0x24   : > { %2674 = vmatpush3.bf16.msra.mxu1 %v515_v24 }
  0x25   : > { %2679 = vmatprep.subr.bf16.mxu1 %v631_v56 }
  0x26   : > { %2648 = vmatmul.mubr.msk.bf16.gmra.mrb[8].mxu0 %vm401_vm2, %v392_v10 }
  0x27   : > { %2676 = vmatmul.mubr.bf16.vlgmr.msra.gmra.mrb[0].mxu1 %v491_v27  ;;  %2651 = vmatprep.mubr.msk.bf16.mxu0 %vm3145_vm0, %v3144_v3  ;;  %v2467_v27 = vld [vmem:[%s4050_s6] ss:$0 sm:$0xff] }
  0x28   : > { %2680 = vmatpush3.bf16.msra.mxu1 %v631_v56 }
  0x29   : > { %2681 = vmatprep.subr.bf16.mxu1 %v632_v59 }
  0x2c   : > { %2682 = vmatpush3.bf16.msra.mxu1 %v632_v59 }
  0x2d   : > { %2711 = vmatprep.subr.bf16.mxu1 %v3144_v3 }
  0x2e   : > { %2652 = vmatmul.mubr.msk.bf16.gmra.mrb[12].mxu0 %vm401_vm2, %v393_v13 }
  0x2f   : > { %2655 = vmatprep.mubr.msk.bf16.mxu0 %vm3145_vm0, %v3144_v3 }
  0x36   : > { %2656 = vmatmul.mubr.msk.bf16.gmra.mrb[16].mxu0 %vm401_vm2, %v394_v15 }
  0x37   : > { %2691 = vmatprep.mubr.msk.bf16.mxu0 %vm3145_vm0, %v3144_v3 }
  0xa0   : > { %v575_v39 = vpop.xlane.xlu1 %574 }
  0xa1   : > { %v579_v40 = vmul.f32 0.03125, %v575_v39 }
  0xa3   : > { %v3303_v43 = vsub.f32 %v381_v28, %v579_v40 }
  0xa5   : > { %v585_v48 = vmul.f32 %v3303_v43, %v3303_v43 }
  0xa7   : > { %v592_v52 = vsel %vm572_vm1, %v585_v48, 0.0 }
  0xfa   : > { %v557_v31 = vpop.f32.mrb[0].mxu1 }
  0xfb   : > { %v558_v32 = vadd.f32 %v2466_v30, %v557_v31  ;;  %v2677_v33 = vpop.f32.mrb[1].mxu1 }
  0xfc   : > { %v560_v34 = vpop.f32.mrb[2].mxu1  ;;  %v2468_v33 = vld [vmem:[%s4051_s7] ss:$0 sm:$0xff] }
  0xfd   : > { %v561_v35 = vadd.f32 %v2466_v30, %v560_v34  ;;  %v2678_v36 = vpop.f32.mrb[3].mxu1  ;;  %v566_v37 = vsel %vm401_vm2, %v558_v32, 0.0 }
  0xfe   : > { %567 = vadd.xlane.f32.xlu0 %v566_v37 }
  0xff   : > { %v569_v38 = vsel %vm401_vm2, %v561_v35, 0.0 }
 0x102   : > { %570 = vadd.xlane.f32.xlu0 %v569_v38 }
 0x18b   : > { %v568_v41 = vpop.xlane.xlu0 %567 }
 0x18c   : > { %v577_v42 = vmul.f32 0.03125, %v568_v41  ;;  %v451_v41 = vpop.f32.mrb[0].mxu0 }
 0x18e   : > { %v3305_v44 = vsub.f32 %v558_v32, %v577_v42  ;;  %v2641_v42 = vpop.f32.mrb[1].mxu0 }
 0x18f   : > { %v571_v45 = vpop.xlane.xlu0 %570 }
 0x190   : > { %v578_v46 = vmul.f32 0.03125, %v571_v45  ;;  %v583_v47 = vmul.f32 %v3305_v44, %v3305_v44 }
 0x192   : > { %v3311_v49 = vsub.f32 %v561_v35, %v578_v46  ;;  %v586_v50 = vsel %vm401_vm2, %v583_v47, 0.0 }
 0x193   : > { %587 = vadd.xlane.f32.xlu1 %v586_v50 }
 0x194   : > { %v584_v51 = vmul.f32 %v3311_v49, %v3311_v49 }
 0x196   : > { %v589_v53 = vsel %vm401_vm2, %v584_v51, 0.0 }
 0x197   : > { %590 = vadd.xlane.f32.xlu0 %v589_v53  ;;  %593 = vadd.xlane.f32.xlu1 %v592_v52 }
 0x220   : > { %v588_v16 = vpop.xlane.xlu1 %587 }
 0x221   : > { %v595_v17 = vmul.f32 0.03125, %v588_v16 }
 0x223   : > { %v598_v18 = vadd.f32 1e-05, %v595_v17 }
 0x224   : > { %v591_v19 = vpop.xlane.xlu0 %590  ;;  %v594_v20 = vpop.xlane.xlu1 %593 }
 0x225   : > { %2986 = vrsqrt.f32 %v598_v18  ;;  %v596_v21 = vmul.f32 0.03125, %v591_v19  ;;  %v597_v22 = vmul.f32 0.03125, %v594_v20 }
 0x227   : > { %v599_v23 = vadd.f32 1e-05, %v596_v21  ;;  %v600_v24 = vadd.f32 1e-05, %v597_v22 }
 0x229   : > { %2988 = vrsqrt.f32 %v599_v23 }
 0x22a   : > { %2990 = vrsqrt.f32 %v600_v24 }
 0x22f   : > { %v2987_v25 = vpop.eup %2986 }
 0x230   : > { %v604_v26 = vmul.f32 %v2987_v25, %v3305_v44 }
 0x232   : > { %v613_v31 = vmul.f32 %v2467_v27, %v604_v26 }
 0x233   : > { %v2989_v28 = vpop.eup %2988 }
 0x234   : > { %v2991_v29 = vpop.eup %2990  ;;  %v605_v30 = vmul.f32 %v2989_v28, %v3311_v49  ;;  %v622_v36 = vadd.f32 %v2468_v33, %v613_v31 }
 0x235   : > { %v606_v32 = vmul.f32 %v2991_v29, %v3303_v43  ;;  %v454_v43 = vpop.f32.mrb[2].mxu0 }
 0x236   : > { %v614_v34 = vmul.f32 %v2467_v27, %v605_v30  ;;  %v3381_v44 = vpack.c.bf16 %v454_v43, %v451_v41  ;;  %v2642_v45 = vpop.f32.mrb[3].mxu0 }
 0x237   : > { %v615_v35 = vmul.f32 %v2467_v27, %v606_v32  ;;  %v459_v46 = vpop.f32.mrb[4].mxu0 }
 0x238   : > { %v623_v37 = vadd.f32 %v2468_v33, %v614_v34  ;;  %v2645_v47 = vpop.f32.mrb[5].mxu0 }
 0x239   : > { %v624_v38 = vadd.f32 %v2468_v33, %v615_v35  ;;  %v462_v48 = vpop.f32.mrb[6].mxu0 }
 0x23a   : > { %v625_v39 = vpack.c.bf16 %v623_v37, %v622_v36  ;;  %v3383_v49 = vpack.c.bf16 %v462_v48, %v459_v46  ;;  %v2646_v50 = vpop.f32.mrb[7].mxu0 }
 0x23b   : > { %v626_v40 = vpack.c.bf16 %v624_v38, %v624_v38  ;;  %v467_v51 = vpop.f32.mrb[8].mxu0 }
 0x23c   : > { %2683 = vmatprep.mubr.msk.bf16.mxu1 %vm401_vm2, %v625_v39  ;;  %v2649_v52 = vpop.f32.mrb[9].mxu0 }
 0x23d   : > { %2684 = vmatmul.mubr.msk.bf16.vlgmr.msra.gmra.mrb[4].mxu1 %vm401_vm2, %v626_v40  ;;  %v470_v53 = vpop.f32.mrb[10].mxu0 }
 0x23e   : > { %2715 = vmatprep.mubr.msk.bf16.mxu1 %vm3145_vm0, %v3144_v3  ;;  %v3385_v54 = vpack.c.bf16 %v470_v53, %v467_v51  ;;  %v2650_v55 = vpop.f32.mrb[11].mxu0 }
 0x23f   : > { %v475_v56 = vpop.f32.mrb[12].mxu0 }
 0x240   : > { %v2653_v57 = vpop.f32.mrb[13].mxu0 }
 0x241   : > { %v478_v58 = vpop.f32.mrb[14].mxu0 }
 0x242   : > { %v3387_v59 = vpack.c.bf16 %v478_v58, %v475_v56  ;;  %v2654_v60 = vpop.f32.mrb[15].mxu0 }
 0x243   : > { %v483_v61 = vpop.f32.mrb[16].mxu0 }
 0x244   : > { %v2657_v62 = vpop.f32.mrb[17].mxu0  ;;  %v3400_v9 = vpack.c.bf16 %v483_v61, %v483_v61 }
 0x245   : > { %v486_v63 = vpop.f32.mrb[18].mxu0 }
 0x246   : > { %v2658_v0 = vpop.f32.mrb[19].mxu0 }
 0x310   : > { %v2685_v1 = vpop.f32.mrb[4].mxu1 }
 0x311   : > { %v3389_v2 = vpack.c.bf16 %v2685_v1, %v2685_v1  ;;  %v673_v4 = vpop.f32.mrb[5].mxu1 }
 0x312   : > { %v2686_v5 = vpop.f32.mrb[6].mxu1 }
 0x313   : > { %1027 = vrot.lane.b32.xlu1 %v3389_v2, %s3146_s24  ;;  %v676_v6 = vpop.f32.mrb[7].mxu1  ;;  %v714_v10 = vsel %vm694_vm3, %v3389_v2, 0 }
 0x314   : > { %v3392_v7 = vpack.c.bf16 %v676_v6, %v673_v4 }
 0x316   : > { %1025 = vrot.lane.b32.xlu0 %v3392_v7, %s3146_s24  ;;  %v711_v8 = vsel %vm694_vm3, %v3392_v7, 0 }
 0x317   : > { %2688 = vmatpush3.bf16.xpose.msra.mxu0 %v711_v8  ;;  %1015 = vrot.lane.b32.xlu1 %v3381_v44, %s3146_s24 }
 0x318   : > { %2689 = vmatprep.subr.bf16.mxu0 %v3144_v3 }
 0x31a   : > { %1019 = vrot.lane.b32.xlu0 %v3385_v54, %s3146_s24 }
 0x31b   : > { %1017 = vrot.lane.b32.xlu1 %v3383_v49, %s3146_s24 }
 0x31e   : > { %1023 = vrot.lane.b32.xlu0 %v3400_v9, %s3146_s24 }
 0x31f   : > { %2690 = vmatpush3.bf16.xpose.msra.mxu0 %v714_v10  ;;  %1021 = vrot.lane.b32.xlu1 %v3387_v59, %s3146_s24 }
 0x320   : > { %2735 = vmatprep.subr.bf16.mxu0 %v3144_v3 }
 0x326   : > { %2692 = vmatmul.mubr.msk.bf16.vlgmr.msra.gmra.mrb[20].mxu0 %vm694_vm3, %v3381_v44 }
 0x327   : > { %2695 = vmatprep.mubr.msk.bf16.mxu0 %vm3145_vm0, %v3144_v3 }
 0x32e   : > { %2696 = vmatmul.mubr.msk.bf16.gmra.mrb[24].mxu0 %vm694_vm3, %v3383_v49 }
 0x32f   : > { %2699 = vmatprep.mubr.msk.bf16.mxu0 %vm3145_vm0, %v3144_v3 }
 0x336   : > { %2700 = vmatmul.mubr.msk.bf16.gmra.mrb[28].mxu0 %vm694_vm3, %v3385_v54 }
 0x337   : > { %2703 = vmatprep.mubr.msk.bf16.mxu0 %vm3145_vm0, %v3144_v3 }
 0x33e   : > { %2704 = vmatmul.mubr.msk.bf16.gmra.mrb[32].mxu0 %vm694_vm3, %v3387_v59 }
 0x33f   : > { %2707 = vmatprep.mubr.msk.bf16.mxu0 %vm3145_vm0, %v3144_v3 }
 0x346   : > { %2708 = vmatmul.mubr.msk.bf16.gmra.mrb[36].mxu0 %vm694_vm3, %v3400_v9 }
 0x347   : > { %2739 = vmatprep.mubr.msk.bf16.mxu0 %vm3145_vm0, %v3144_v3 }
 0x385   : > { %v1028_v13 = vpop.permute.xlu1 %1027 }
 0x386   : > { %v1048_v14 = vsel %vm694_vm3, %v1028_v13, 0 }
 0x388   : > { %v1026_v11 = vpop.permute.xlu0 %1025 }
 0x389   : > { %v1045_v12 = vsel %vm694_vm3, %v1026_v11, 0  ;;  %v1016_v15 = vpop.permute.xlu1 %1015 }
 0x38a   : > { %2736 = vmatpush3.bf16.xpose.msra.mxu0 %v1045_v12 }
 0x38b   : > { %2737 = vmatprep.subr.bf16.mxu0 %v3144_v3 }
 0x38c   : > { %v1020_v17 = vpop.permute.xlu0 %1019 }
 0x38d   : > { %v1018_v16 = vpop.permute.xlu1 %1017 }
 0x390   : > { %v1024_v19 = vpop.permute.xlu0 %1023 }
 0x391   : > { %v1022_v18 = vpop.permute.xlu1 %1021 }
 0x392   : > { %2738 = vmatpush3.bf16.xpose.msra.mxu0 %v1048_v14 }
 0x393   : > { %2783 = vmatprep.subr.bf16.mxu0 %v3144_v3 }
 0x399   : > { %2740 = vmatmul.mubr.msk.bf16.vlgmr.msra.gmra.mrb[40].mxu0 %vm694_vm3, %v1016_v15 }
 0x39a   : > { %2743 = vmatprep.mubr.msk.bf16.mxu0 %vm3145_vm0, %v3144_v3 }
 0x3a1   : > { %2744 = vmatmul.mubr.msk.bf16.gmra.mrb[44].mxu0 %vm694_vm3, %v1018_v16 }
 0x3a2   : > { %2747 = vmatprep.mubr.msk.bf16.mxu0 %vm3145_vm0, %v3144_v3 }
 0x3a9   : > { %2748 = vmatmul.mubr.msk.bf16.gmra.mrb[48].mxu0 %vm694_vm3, %v1020_v17 }
 0x3aa   : > { %2751 = vmatprep.mubr.msk.bf16.mxu0 %vm3145_vm0, %v3144_v3 }
 0x3b1   : > { %2752 = vmatmul.mubr.msk.bf16.gmra.mrb[52].mxu0 %vm694_vm3, %v1022_v18 }
 0x3b2   : > { %2755 = vmatprep.mubr.msk.bf16.mxu0 %vm3145_vm0, %v3144_v3 }
 0x3b9   : > { %2756 = vmatmul.mubr.msk.bf16.gmra.mrb[56].mxu0 %vm694_vm3, %v1024_v19 }
 0x3ba   : > { %2785 = vmatprep.mubr.msk.bf16.mxu0 %vm3145_vm0, %v3144_v3 }
 0x3f9   : > { %v750_v20 = vpop.f32.mrb[20].mxu0 }
 0x3fa   : > { %v3447_v21 = vmul.f32 0.35355338, %v750_v20  ;;  %v2693_v22 = vpop.f32.mrb[21].mxu0 }
 0x3fb   : > { %v753_v23 = vpop.f32.mrb[22].mxu0 }
 0x3fc   : > { %v3449_v24 = vmul.f32 0.35355338, %v753_v23  ;;  %v798_v25 = vsel %vm797_vm4, %v3447_v21, -inf  ;;  %v2694_v26 = vpop.f32.mrb[23].mxu0 }
 0x3fd   : > { %799 = vmax.xlane.f32.xlu1 %v798_v25 }
 0x3fe   : > { %v801_v27 = vsel %vm797_vm4, %v3449_v24, -inf }
 0x3ff   : > { %802 = vmax.xlane.f32.xlu0 %v801_v27 }
 0x401   : > { %v758_v28 = vpop.f32.mrb[24].mxu0 }
 0x402   : > { %v3455_v29 = vmul.f32 0.35355338, %v758_v28  ;;  %v2697_v30 = vpop.f32.mrb[25].mxu0 }
 0x403   : > { %v761_v31 = vpop.f32.mrb[26].mxu0 }
 0x404   : > { %v804_v32 = vsel %vm797_vm4, %v3455_v29, -inf  ;;  %v3459_v33 = vmul.f32 0.35355338, %v761_v31  ;;  %v2698_v34 = vpop.f32.mrb[27].mxu0 }
 0x405   : > { %805 = vmax.xlane.f32.xlu0 %v804_v32 }
 0x406   : > { %v807_v35 = vsel %vm797_vm4, %v3459_v33, -inf }
 0x409   : > { %808 = vmax.xlane.f32.xlu0 %v807_v35  ;;  %v766_v36 = vpop.f32.mrb[28].mxu0 }
 0x40a   : > { %v3463_v37 = vmul.f32 0.35355338, %v766_v36  ;;  %v2701_v38 = vpop.f32.mrb[29].mxu0 }
 0x40b   : > { %v769_v39 = vpop.f32.mrb[30].mxu0 }
 0x40c   : > { %v3465_v40 = vmul.f32 0.35355338, %v769_v39  ;;  %v810_v41 = vsel %vm797_vm4, %v3463_v37, -inf  ;;  %v2702_v42 = vpop.f32.mrb[31].mxu0 }
 0x40d   : > { %811 = vmax.xlane.f32.xlu1 %v810_v41 }
 0x40e   : > { %v813_v43 = vsel %vm797_vm4, %v3465_v40, -inf }
 0x40f   : > { %814 = vmax.xlane.f32.xlu0 %v813_v43 }
 0x411   : > { %v774_v45 = vpop.f32.mrb[32].mxu0 }
 0x412   : > { %v3471_v46 = vmul.f32 0.35355338, %v774_v45  ;;  %v2705_v47 = vpop.f32.mrb[33].mxu0 }
 0x413   : > { %v777_v48 = vpop.f32.mrb[34].mxu0 }
 0x414   : > { %v3473_v50 = vmul.f32 0.35355338, %v777_v48  ;;  %v816_v51 = vsel %vm797_vm4, %v3471_v46, -inf  ;;  %v2706_v52 = vpop.f32.mrb[35].mxu0 }
 0x415   : > { %817 = vmax.xlane.f32.xlu1 %v816_v51 }
 0x416   : > { %v819_v53 = vsel %vm797_vm4, %v3473_v50, -inf }
 0x417   : > { %820 = vmax.xlane.f32.xlu0 %v819_v53 }
 0x419   : > { %v782_v55 = vpop.f32.mrb[36].mxu0 }
 0x41a   : > { %v3479_v56 = vmul.f32 0.35355338, %v782_v55  ;;  %v2709_v57 = vpop.f32.mrb[37].mxu0 }
 0x41b   : > { %v785_v58 = vpop.f32.mrb[38].mxu0 }
 0x41c   : > { %v823_v60 = vsel %vm822_vm5, %v3479_v56, -inf  ;;  %v2710_v61 = vpop.f32.mrb[39].mxu0 }
 0x41d   : > { %824 = vmax.xlane.f32.xlu1 %v823_v60 }
 0x46c   : > { %v1084_v62 = vpop.f32.mrb[40].mxu0 }
 0x46d   : > { %v3483_v63 = vmul.f32 0.35355338, %v1084_v62  ;;  %v2741_v0 = vpop.f32.mrb[41].mxu0 }
 0x46e   : > { %v1087_v1 = vpop.f32.mrb[42].mxu0 }
 0x46f   : > { %v3485_v4 = vmul.f32 0.35355338, %v1087_v1  ;;  %v1131_v5 = vsel %vm797_vm4, %v3483_v63, -inf  ;;  %v2742_v6 = vpop.f32.mrb[43].mxu0 }
 0x470   : > { %1132 = vmax.xlane.f32.xlu0 %v1131_v5 }
 0x471   : > { %v1134_v8 = vsel %vm797_vm4, %v3485_v4, -inf }
 0x472   : > { %1135 = vmax.xlane.f32.xlu1 %v1134_v8 }
 0x474   : > { %v1092_v10 = vpop.f32.mrb[44].mxu0 }
 0x475   : > { %v3491_v11 = vmul.f32 0.35355338, %v1092_v10  ;;  %v2745_v12 = vpop.f32.mrb[45].mxu0 }
 0x476   : > { %v1095_v13 = vpop.f32.mrb[46].mxu0 }
 0x477   : > { %v3493_v14 = vmul.f32 0.35355338, %v1095_v13  ;;  %v1137_v15 = vsel %vm797_vm4, %v3491_v11, -inf  ;;  %v2746_v16 = vpop.f32.mrb[47].mxu0 }
 0x478   : > { %1138 = vmax.xlane.f32.xlu0 %v1137_v15 }
 0x479   : > { %v1140_v17 = vsel %vm797_vm4, %v3493_v14, -inf }
 0x47a   : > { %1141 = vmax.xlane.f32.xlu1 %v1140_v17 }
 0x47c   : > { %v1100_v18 = vpop.f32.mrb[48].mxu0 }
 0x47d   : > { %v3499_v19 = vmul.f32 0.35355338, %v1100_v18  ;;  %v2749_v20 = vpop.f32.mrb[49].mxu0 }
 0x47e   : > { %v1103_v22 = vpop.f32.mrb[50].mxu0 }
 0x47f   : > { %v3501_v23 = vmul.f32 0.35355338, %v1103_v22  ;;  %v1143_v25 = vsel %vm797_vm4, %v3499_v19, -inf  ;;  %v2750_v26 = vpop.f32.mrb[51].mxu0 }
 0x480   : > { %1144 = vmax.xlane.f32.xlu0 %v1143_v25 }
 0x481   : > { %v1146_v27 = vsel %vm797_vm4, %v3501_v23, -inf }
 0x482   : > { %1147 = vmax.xlane.f32.xlu1 %v1146_v27 }
 0x484   : > { %v1108_v28 = vpop.f32.mrb[52].mxu0 }
 0x485   : > { %v3507_v30 = vmul.f32 0.35355338, %v1108_v28  ;;  %v2753_v31 = vpop.f32.mrb[53].mxu0 }
 0x486   : > { %v1111_v32 = vpop.f32.mrb[54].mxu0 }
 0x487   : > { %v3509_v34 = vmul.f32 0.35355338, %v1111_v32  ;;  %v1149_v35 = vsel %vm797_vm4, %v3507_v30, -inf  ;;  %v2754_v36 = vpop.f32.mrb[55].mxu0 }
 0x488   : > { %1150 = vmax.xlane.f32.xlu0 %v1149_v35 }
 0x489   : > { %v1152_v38 = vsel %vm797_vm4, %v3509_v34, -inf }
 0x48a   : > { %1153 = vmax.xlane.f32.xlu1 %v1152_v38  ;;  %v800_v48 = vpop.xlane.xlu1 %799 }
 0x48b   : > { %v826_v52 = vsub.f32 %v3447_v21, %v800_v48 }
 0x48c   : > { %v1116_v39 = vpop.f32.mrb[56].mxu0  ;;  %v803_v51 = vpop.xlane.xlu0 %802 }
 0x48d   : > { %v3515_v41 = vmul.f32 0.35355338, %v1116_v39  ;;  %v2757_v42 = vpop.f32.mrb[57].mxu0  ;;  %v835_v57 = vmul.f32 1.442695, %v826_v52  ;;  %v827_v61 = vsub.f32 %v3449_v24, %v803_v51 }
 0x48e   : > { %v1119_v43 = vpop.f32.mrb[58].mxu0 }
 0x48f   : > { %v1155_v45 = vsel %vm822_vm5, %v3515_v41, -inf  ;;  %v2758_v47 = vpop.f32.mrb[59].mxu0  ;;  %2992 = vpow2.f32 %v835_v57  ;;  %v837_v6 = vmul.f32 1.442695, %v827_v61 }
 0x490   : > { %1156 = vmax.xlane.f32.xlu0 %v1155_v45 }
 0x492   : > { %v806_v53 = vpop.xlane.xlu0 %805 }
 0x493   : > { %v828_v58 = vsub.f32 %v3455_v29, %v806_v53 }
 0x495   : > { %v839_v0 = vmul.f32 1.442695, %v828_v58 }
 0x496   : > { %v809_v62 = vpop.xlane.xlu0 %808 }
 0x497   : > { %v829_v8 = vsub.f32 %v3459_v33, %v809_v62  ;;  %2994 = vpow2.f32 %v839_v0 }
 0x498   : > { %2996 = vpow2.f32 %v837_v6 }
 0x499   : > { %v841_v13 = vmul.f32 1.442695, %v829_v8  ;;  %v3528_v15 = vpop.eup %2992 }
 0x49a   : > { %v812_v55 = vpop.xlane.xlu1 %811  ;;  %v853_v33 = vsel %vm797_vm4, %v3528_v15, 0.0 }
 0x49b   : > { %905 = vrot.lane.b32.xlu1 %v3392_v7, %s3147_s25  ;;  %v830_v1 = vsub.f32 %v3463_v37, %v812_v55 }
 0x49c   : > { %v815_v10 = vpop.xlane.xlu0 %814 }
 0x49d   : > { %v843_v21 = vmul.f32 1.442695, %v830_v1  ;;  %v831_v29 = vsub.f32 %v3465_v40, %v815_v10 }
 0x49f   : > { %2998 = vpow2.f32 %v843_v21  ;;  %v845_v16 = vmul.f32 1.442695, %v831_v29 }
 0x4a0   : > { %3000 = vpow2.f32 %v841_v13 }
 0x4a1   : > { %v3533_v18 = vpop.eup %2994 }
 0x4a2   : > { %v818_v60 = vpop.xlane.xlu1 %817  ;;  %v3536_v40 = vpop.eup %2996  ;;  %v859_v22 = vsel %vm797_vm4, %v3533_v18, 0.0 }
 0x4a3   : > { %v832_v37 = vsub.f32 %v3471_v46, %v818_v60  ;;  %v856_v26 = vsel %vm797_vm4, %v3536_v40, 0.0 }
 0x4a4   : > { %v821_v17 = vpop.xlane.xlu0 %820 }
 0x4a5   : > { %v833_v20 = vsub.f32 %v3473_v50, %v821_v17 }
 0x4a6   : > { %907 = vrot.lane.b32.xlu0 %v3389_v2, %s3147_s25 }
 0x4a7   : > { %v849_v46 = vmul.f32 1.442695, %v833_v20 }
 0x4a9   : > { %v3540_v25 = vpop.eup %2998 }
 0x4aa   : > { %v825_v5 = vpop.xlane.xlu1 %824  ;;  %v3544_v27 = vpop.eup %3000  ;;  %v865_v50 = vsel %vm797_vm4, %v3540_v25, 0.0 }
 0x4ab   : > { %v834_v12 = vsub.f32 %v3479_v56, %v825_v5  ;;  %v847_v56 = vmul.f32 1.442695, %v832_v37  ;;  %v862_v31 = vsel %vm797_vm4, %v3544_v27, 0.0 }
 0x4ad   : > { %v851_v24 = vmul.f32 1.442695, %v834_v12 }
 0x4af   : > { %3002 = vpow2.f32 %v851_v24 }
 0x4b0   : > { %3004 = vpow2.f32 %v845_v16 }
 0x4b1   : > { %3006 = vpow2.f32 %v847_v56 }
 0x4b2   : > { %3008 = vpow2.f32 %v849_v46  ;;  %v3148_v46 = vmov 0  }
 0x4b9   : > { %v3548_v28 = vpop.eup %3002 }
 0x4ba   : > { %v3552_v32 = vpop.eup %3004  ;;  %v877_v35 = vsel %vm822_vm5, %v3548_v28, 0.0 }
 0x4bb   : > { %v868_v36 = vsel %vm797_vm4, %v3552_v32, 0.0  ;;  %v3558_v38 = vpop.eup %3006 }
 0x4bc   : > { %v871_v39 = vsel %vm797_vm4, %v3558_v38, 0.0  ;;  %v3562_v42 = vpop.eup %3008 }
 0x4bd   : > { %v874_v43 = vsel %vm797_vm4, %v3562_v42, 0.0 }
 0x4bf   : > { %854 = vadd.xlane.f32.xlu1 %v853_v33 }
 0x4c3   : > { %860 = vadd.xlane.f32.xlu1 %v859_v22 }
 0x4c5   : > { %857 = vadd.xlane.f32.xlu0 %v856_v26  ;;  %v3599_v26 = vsel %vm925_vm6, 65535, %v3148_v46 }
 0x4c7   : > { %866 = vadd.xlane.f32.xlu1 %v865_v50 }
 0x4c9   : > { %863 = vadd.xlane.f32.xlu0 %v862_v31 }
 0x4cb   : > { %878 = vadd.xlane.f32.xlu1 %v877_v35 }
 0x4cd   : > { %869 = vadd.xlane.f32.xlu0 %v868_v36 }
 0x4d1   : > { %872 = vadd.xlane.f32.xlu0 %v871_v39 }
 0x4d5   : > { %875 = vadd.xlane.f32.xlu0 %v874_v43 }
 0x4fd   : > { %v1133_v45 = vpop.xlane.xlu0 %1132 }
 0x4fe   : > { %v1158_v47 = vsub.f32 %v3483_v63, %v1133_v45 }
 0x4ff   : > { %v1136_v48 = vpop.xlane.xlu1 %1135 }
 0x500   : > { %v1167_v51 = vmul.f32 1.442695, %v1158_v47  ;;  %v1159_v52 = vsub.f32 %v3485_v4, %v1136_v48 }
 0x502   : > { %3010 = vpow2.f32 %v1167_v51  ;;  %v1169_v53 = vmul.f32 1.442695, %v1159_v52 }
 0x504   : > { %3012 = vpow2.f32 %v1169_v53 }
 0x505   : > { %v1139_v55 = vpop.xlane.xlu0 %1138 }
 0x506   : > { %v1160_v57 = vsub.f32 %v3491_v11, %v1139_v55 }
 0x507   : > { %v1142_v58 = vpop.xlane.xlu1 %1141 }
 0x508   : > { %v1171_v60 = vmul.f32 1.442695, %v1160_v57  ;;  %v1161_v61 = vsub.f32 %v3493_v14, %v1142_v58 }
 0x50a   : > { %3014 = vpow2.f32 %v1171_v60  ;;  %v1173_v62 = vmul.f32 1.442695, %v1161_v61 }
 0x50c   : > { %v3570_v0 = vpop.eup %3010  ;;  %3016 = vpow2.f32 %v1173_v62 }
 0x50d   : > { %v1145_v63 = vpop.xlane.xlu0 %1144  ;;  %v1185_v1 = vsel %vm797_vm4, %v3570_v0, 0.0 }
 0x50e   : > { %v3574_v4 = vpop.eup %3012  ;;  %v1162_v5 = vsub.f32 %v3499_v19, %v1145_v63  ;;  %1186 = vadd.xlane.f32.xlu0 %v1185_v1 }
 0x50f   : > { %v1148_v6 = vpop.xlane.xlu1 %1147  ;;  %v1188_v11 = vsel %vm797_vm4, %v3574_v4, 0.0 }
 0x510   : > { %v1175_v8 = vmul.f32 1.442695, %v1162_v5  ;;  %v1163_v14 = vsub.f32 %v3501_v23, %v1148_v6  ;;  %1189 = vadd.xlane.f32.xlu1 %v1188_v11 }
 0x512   : > { %3018 = vpow2.f32 %v1175_v8  ;;  %v1177_v10 = vmul.f32 1.442695, %v1163_v14 }
 0x514   : > { %v3580_v21 = vpop.eup %3014  ;;  %3020 = vpow2.f32 %v1177_v10 }
 0x515   : > { %v1151_v12 = vpop.xlane.xlu0 %1150  ;;  %v1191_v13 = vsel %vm797_vm4, %v3580_v21, 0.0 }
 0x516   : > { %v3584_v29 = vpop.eup %3016  ;;  %v1164_v19 = vsub.f32 %v3507_v30, %v1151_v12  ;;  %1192 = vadd.xlane.f32.xlu1 %v1191_v13 }
 0x517   : > { %v1154_v24 = vpop.xlane.xlu1 %1153  ;;  %v1194_v23 = vsel %vm797_vm4, %v3584_v29, 0.0 }
 0x518   : > { %v1179_v16 = vmul.f32 1.442695, %v1164_v19  ;;  %v1165_v37 = vsub.f32 %v3509_v34, %v1154_v24 }
 0x51a   : > { %3022 = vpow2.f32 %v1179_v16  ;;  %v1181_v17 = vmul.f32 1.442695, %v1165_v37  ;;  %1195 = vadd.xlane.f32.xlu1 %v1194_v23 }
 0x51b   : > { %v906_v33 = vpop.permute.xlu1 %905 }
 0x51c   : > { %v3590_v56 = vpop.eup %3018  ;;  %3024 = vpow2.f32 %v1181_v17  ;;  %2712 = vmatpush3.bf16.msra.mxu1 %v906_v33 }
 0x51d   : > { %v1157_v20 = vpop.xlane.xlu0 %1156  ;;  %v1197_v30 = vsel %vm797_vm4, %v3590_v56, 0.0  ;;  %2713 = vmatprep.subr.bf16.mxu1 %v3144_v3 }
 0x51e   : > { %v3595_v22 = vpop.eup %3020  ;;  %1198 = vadd.xlane.f32.xlu0 %v1197_v30  ;;  %v1166_v45 = vsub.f32 %v3515_v41, %v1157_v20 }
 0x51f   : > { %v1200_v34 = vsel %vm797_vm4, %v3595_v22, 0.0 }
 0x520   : > { %1201 = vadd.xlane.f32.xlu1 %v1200_v34  ;;  %v1183_v47 = vmul.f32 1.442695, %v1166_v45 }
 0x521   : > { %v908_v50 = vpop.permute.xlu0 %907 }
 0x522   : > { %v929_v31 = vand.u32 %v3599_v26, %v908_v50  ;;  %3026 = vpow2.f32 %v1183_v47 }
 0x524   : > { %v3602_v35 = vpop.eup %3022  ;;  %2714 = vmatpush3.bf16.msra.mxu1 %v929_v31 }
 0x525   : > { %v1203_v36 = vsel %vm797_vm4, %v3602_v35, 0.0  ;;  %2759 = vmatprep.subr.bf16.mxu1 %v3144_v3 }
 0x526   : > { %v3607_v39 = vpop.eup %3024  ;;  %1204 = vadd.xlane.f32.xlu1 %v1203_v36 }
 0x527   : > { %v1206_v43 = vsel %vm797_vm4, %v3607_v39, 0.0 }
 0x52a   : > { %1207 = vadd.xlane.f32.xlu1 %v1206_v43  ;;  %v1003_v43 = vld [vmem:[%s4052_s8] sm:$0xff] }
 0x52c   : > { %v3618_v51 = vpop.eup %3026 }
 0x52d   : > { %v1209_v41 = vsel %vm822_vm5, %v3618_v51, 0.0 }
 0x534   : > { %1235 = vrot.lane.b32.xlu0 %v3392_v7, %s3149_s26 }
 0x53b   : > { %1237 = vrot.lane.b32.xlu1 %v3389_v2, %s3149_s26  ;;  %s4013_s26 = scalar_lea.vmem %s4054_s10, %s2967_s15 }
 0x53f   : > { %1528 = vrot.lane.b32.xlu1 %v3392_v7, %s3150_s27 }
 0x543   : > { %1530 = vrot.lane.b32.xlu1 %v3389_v2, %s3150_s27 }
 0x547   : > { %1518 = vrot.lane.b32.xlu1 %v3381_v44, %s3150_s27 }
 0x54b   : > { %1520 = vrot.lane.b32.xlu1 %v3383_v49, %s3150_s27 }
 0x54c   : > { %v855_v48 = vpop.xlane.xlu1 %854 }
 0x54d   : > { %3028 = vrcp.f32 %v855_v48 }
 0x54f   : > { %1522 = vrot.lane.b32.xlu1 %v3385_v54, %s3150_s27 }
 0x550   : > { %v861_v53 = vpop.xlane.xlu1 %860 }
 0x552   : > { %v858_v52 = vpop.xlane.xlu0 %857 }
 0x553   : > { %3030 = vrcp.f32 %v858_v52  ;;  %1524 = vrot.lane.b32.xlu1 %v3387_v59, %s3150_s27  ;;  %1210 = vadd.xlane.f32.xlu0 %v1209_v41  ;;  %v1004_v52 = vpack.c.bf16 %v1003_v43, %v1003_v43 }
 0x554   : > { %v867_v63 = vpop.xlane.xlu1 %866 }
 0x556   : > { %v864_v55 = vpop.xlane.xlu0 %863 }
 0x557   : > { %3032 = vrcp.f32 %v864_v55  ;;  %1526 = vrot.lane.b32.xlu1 %v3400_v9, %s3150_s27  ;;  %v3029_v58 = vpop.eup %3028 }
 0x558   : > { %3034 = vrcp.f32 %v861_v53  ;;  %v881_v61 = vmul.f32 %v3029_v58, %v3528_v15  ;;  %v879_v13 = vpop.xlane.xlu1 %878 }
 0x55a   : > { %v870_v57 = vpop.xlane.xlu0 %869 }
 0x55b   : > { %3036 = vrcp.f32 %v870_v57  ;;  %v1444_v57 = vsel %vm1352_vm7, %v1004_v52, 0 }
 0x55c   : > { %3038 = vrcp.f32 %v867_v63 }
 0x55d   : > { %v3031_v60 = vpop.eup %3030 }
 0x55e   : > { %v883_v62 = vmul.f32 %v3031_v60, %v3536_v40  ;;  %v873_v1 = vpop.xlane.xlu0 %872 }
 0x560   : > { %v898_v5 = vpack.c.bf16 %v883_v62, %v881_v61 }
 0x561   : > { %v3033_v6 = vpop.eup %3032 }
 0x562   : > { %2716 = vmatmul.mubr.msk.bf16.vlgmr.msra.gmra.mrb[8].mxu1 %vm797_vm4, %v898_v5  ;;  %v3035_v11 = vpop.eup %3034  ;;  %v876_v8 = vpop.xlane.xlu0 %875  ;;  %v887_v14 = vmul.f32 %v3033_v6, %v3544_v27 }
 0x563   : > { %2719 = vmatprep.mubr.msk.bf16.mxu1 %vm3145_vm0, %v3144_v3  ;;  %v885_v10 = vmul.f32 %v3035_v11, %v3533_v18  ;;  %3040 = vrcp.f32 %v876_v8 }
 0x564   : > { %3042 = vrcp.f32 %v873_v1 }
 0x565   : > { %v899_v15 = vpack.c.bf16 %v887_v14, %v885_v10  ;;  %v3037_v40 = vpop.eup %3036  ;;  %3044 = vrcp.f32 %v879_v13 }
 0x566   : > { %v3039_v12 = vpop.eup %3038  ;;  %v891_v19 = vmul.f32 %v3037_v40, %v3552_v32 }
 0x567   : > { %v889_v24 = vmul.f32 %v3039_v12, %v3540_v25 }
 0x569   : > { %v900_v16 = vpack.c.bf16 %v891_v19, %v889_v24 }
 0x56a   : > { %2720 = vmatmul.mubr.msk.bf16.gmra.mrb[12].mxu1 %vm797_vm4, %v899_v15 }
 0x56b   : > { %2723 = vmatprep.mubr.msk.bf16.mxu1 %vm3145_vm0, %v3144_v3 }
 0x56d   : > { %v3041_v27 = vpop.eup %3040 }
 0x56e   : > { %v3043_v18 = vpop.eup %3042  ;;  %v895_v37 = vmul.f32 %v3041_v27, %v3562_v42 }
 0x56f   : > { %v893_v23 = vmul.f32 %v3043_v18, %v3558_v38  ;;  %v3045_v33 = vpop.eup %3044 }
 0x570   : > { %v897_v25 = vmul.f32 %v3045_v33, %v3548_v28 }
 0x571   : > { %v901_v17 = vpack.c.bf16 %v895_v37, %v893_v23 }
 0x572   : > { %2724 = vmatmul.mubr.msk.bf16.gmra.mrb[16].mxu1 %vm797_vm4, %v900_v16  ;;  %v902_v32 = vpack.c.bf16 %v897_v25, %v897_v25 }
 0x573   : > { %2727 = vmatprep.mubr.msk.bf16.mxu1 %vm3145_vm0, %v3144_v3 }
 0x57a   : > { %2728 = vmatmul.mubr.msk.bf16.gmra.mrb[20].mxu1 %vm797_vm4, %v901_v17 }
 0x57b   : > { %2731 = vmatprep.mubr.msk.bf16.mxu1 %vm3145_vm0, %v3144_v3 }
 0x582   : > { %2732 = vmatmul.mubr.msk.bf16.gmra.mrb[24].mxu1 %vm797_vm4, %v902_v32 }
 0x583   : > { %2763 = vmatprep.mubr.msk.bf16.mxu1 %vm3145_vm0, %v3144_v3 }
 0x59b   : > { %v1187_v42 = vpop.xlane.xlu0 %1186 }
 0x59d   : > { %v1190_v20 = vpop.xlane.xlu1 %1189 }
 0x59e   : > { %3046 = vrcp.f32 %v1190_v20 }
 0x59f   : > { %3048 = vrcp.f32 %v1187_v42 }
 0x5a3   : > { %v1193_v30 = vpop.xlane.xlu1 %1192 }
 0x5a7   : > { %v1196_v34 = vpop.xlane.xlu1 %1195 }
 0x5a8   : > { %3050 = vrcp.f32 %v1196_v34  ;;  %v3047_v36 = vpop.eup %3046 }
 0x5a9   : > { %3052 = vrcp.f32 %v1193_v30  ;;  %v3049_v45 = vpop.eup %3048  ;;  %v1215_v47 = vmul.f32 %v3047_v36, %v3574_v4 }
 0x5aa   : > { %v1213_v53 = vmul.f32 %v3049_v45, %v3570_v0 }
 0x5ab   : > { %v1199_v38 = vpop.xlane.xlu0 %1198 }
 0x5ac   : > { %v1230_v55 = vpack.c.bf16 %v1215_v47, %v1213_v53 }
 0x5ad   : > { %v1202_v46 = vpop.xlane.xlu1 %1201 }
 0x5ae   : > { %3054 = vrcp.f32 %v1202_v46 }
 0x5af   : > { %v1236_v50 = vpop.permute.xlu0 %1235  ;;  %3056 = vrcp.f32 %v1199_v38 }
 0x5b0   : > { %2760 = vmatpush3.bf16.msra.mxu1 %v1236_v50 }
 0x5b1   : > { %2761 = vmatprep.subr.bf16.mxu1 %v3144_v3 }
 0x5b2   : > { %v3051_v58 = vpop.eup %3050 }
 0x5b3   : > { %v1205_v31 = vpop.xlane.xlu1 %1204  ;;  %v3053_v60 = vpop.eup %3052  ;;  %v1219_v4 = vmul.f32 %v3051_v58, %v3584_v29 }
 0x5b4   : > { %v1217_v0 = vmul.f32 %v3053_v60, %v3580_v21 }
 0x5b6   : > { %v1231_v61 = vpack.c.bf16 %v1219_v4, %v1217_v0 }
 0x5b7   : > { %v1208_v28 = vpop.xlane.xlu1 %1207 }
 0x5b8   : > { %3058 = vrcp.f32 %v1208_v28  ;;  %v3055_v62 = vpop.eup %3054 }
 0x5b9   : > { %3060 = vrcp.f32 %v1205_v31  ;;  %v3057_v63 = vpop.eup %3056  ;;  %v1223_v1 = vmul.f32 %v3055_v62, %v3595_v22 }
 0x5ba   : > { %v1221_v5 = vmul.f32 %v3057_v63, %v3590_v56  ;;  %v1330_v56 = vld [vmem:[%s4052_s8 + $0x8] sm:$0xff] }
 0x5bb   : > { %v1238_v48 = vpop.permute.xlu1 %1237  ;;  %v1331_v22 = vpack.c.bf16 %v1330_v56, %v1330_v56 }
 0x5bc   : > { %v1256_v41 = vand.u32 %v1238_v48, %v3599_v26  ;;  %v1232_v6 = vpack.c.bf16 %v1223_v1, %v1221_v5 }
 0x5bd   : > { %v1354_v10 = vsel %vm1352_vm7, %v1331_v22, 0 }
 0x5be   : > { %2762 = vmatpush3.bf16.msra.mxu1 %v1256_v41  ;;  %2784 = vmatpush3.bf16.msra.mxu0 %v1354_v10 }
 0x5bf   : > { %2805 = vmatprep.subr.bf16.mxu1 %v3144_v3  ;;  %2827 = vmatprep.subr.bf16.mxu0 %v3144_v3  ;;  %v1529_v48 = vpop.permute.xlu1 %1528 }
 0x5c1   : > { %2764 = vmatmul.mubr.msk.bf16.vlgmr.msra.gmra.mrb[28].mxu1 %vm797_vm4, %v1230_v55  ;;  %v1548_v55 = vsel %vm694_vm3, %v1529_v48, 0 }
 0x5c2   : > { %2767 = vmatprep.mubr.msk.bf16.mxu1 %vm3145_vm0, %v3144_v3  ;;  %2806 = vmatpush3.bf16.msra.mxu1 %v1444_v57  ;;  %v3059_v29 = vpop.eup %3058 }
 0x5c3   : > { %2851 = vmatprep.subr.bf16.mxu1 %v3144_v3  ;;  %v3061_v11 = vpop.eup %3060  ;;  %v1227_v21 = vmul.f32 %v3059_v29, %v3607_v39  ;;  %v1531_v60 = vpop.permute.xlu1 %1530 }
 0x5c4   : > { %v1225_v8 = vmul.f32 %v3061_v11, %v3602_v35  ;;  %v1551_v62 = vsel %vm694_vm3, %v1531_v60, 0 }
 0x5c6   : > { %v1233_v14 = vpack.c.bf16 %v1227_v21, %v1225_v8 }
 0x5c9   : > { %2768 = vmatmul.mubr.msk.bf16.gmra.mrb[32].mxu1 %vm797_vm4, %v1231_v61 }
 0x5ca   : > { %2771 = vmatprep.mubr.msk.bf16.mxu1 %vm3145_vm0, %v3144_v3 }
 0x5d1   : > { %2772 = vmatmul.mubr.msk.bf16.gmra.mrb[36].mxu1 %vm797_vm4, %v1232_v6 }
 0x5d2   : > { %2775 = vmatprep.mubr.msk.bf16.mxu1 %vm3145_vm0, %v3144_v3 }
 0x5d9   : > { %2776 = vmatmul.mubr.msk.bf16.gmra.mrb[40].mxu1 %vm797_vm4, %v1233_v14 }
 0x5da   : > { %2779 = vmatprep.mubr.msk.bf16.mxu1 %vm3145_vm0, %v3144_v3 }
 0x5e0   : > { %v1211_v15 = vpop.xlane.xlu0 %1210 }
 0x5e1   : > { %3062 = vrcp.f32 %v1211_v15 }
 0x5eb   : > { %v3063_v39 = vpop.eup %3062 }
 0x5ec   : > { %v1229_v35 = vmul.f32 %v3063_v39, %v3618_v51 }
 0x5ee   : > { %v1234_v40 = vpack.c.bf16 %v1229_v35, %v1229_v35 }
 0x5f0   : > { %2780 = vmatmul.mubr.msk.bf16.gmra.mrb[44].mxu1 %vm797_vm4, %v1234_v40  ;;  %v1519_v40 = vpop.permute.xlu1 %1518 }
 0x5f1   : > { %2807 = vmatprep.mubr.msk.bf16.mxu1 %vm3145_vm0, %v3144_v3 }
 0x635   : > { %v965_v12 = vpop.f32.mrb[8].mxu1 }
 0x636   : > { %v2717_v13 = vpop.f32.mrb[9].mxu1 }
 0x637   : > { %v968_v19 = vpop.f32.mrb[10].mxu1 }
 0x638   : > { %v1005_v24 = vpack.c.bf16 %v968_v19, %v965_v12  ;;  %v2718_v16 = vpop.f32.mrb[11].mxu1  ;;  %v1521_v12 = vpop.permute.xlu1 %1520 }
 0x63a   : > { %2808 = vmatmul.mubr.msk.bf16.vlgmr.msra.gmra.mrb[48].mxu1 %vm694_vm3, %v1005_v24 }
 0x63b   : > { %2811 = vmatprep.mubr.msk.bf16.mxu1 %vm3145_vm0, %v3144_v3 }
 0x63c   : > { %v1523_v13 = vpop.permute.xlu1 %1522 }
 0x63d   : > { %v973_v27 = vpop.f32.mrb[12].mxu1 }
 0x63e   : > { %v2721_v18 = vpop.f32.mrb[13].mxu1 }
 0x63f   : > { %v976_v37 = vpop.f32.mrb[14].mxu1 }
 0x640   : > { %v1006_v51 = vpack.c.bf16 %v976_v37, %v973_v27  ;;  %v2722_v23 = vpop.f32.mrb[15].mxu1  ;;  %v1525_v19 = vpop.permute.xlu1 %1524 }
 0x642   : > { %2812 = vmatmul.mubr.msk.bf16.gmra.mrb[52].mxu1 %vm694_vm3, %v1006_v51 }
 0x643   : > { %2815 = vmatprep.mubr.msk.bf16.mxu1 %vm3145_vm0, %v3144_v3 }
 0x644   : > { %v1527_v24 = vpop.permute.xlu1 %1526 }
 0x645   : > { %v981_v17 = vpop.f32.mrb[16].mxu1 }
 0x646   : > { %v2725_v33 = vpop.f32.mrb[17].mxu1 }
 0x647   : > { %v984_v25 = vpop.f32.mrb[18].mxu1 }
 0x648   : > { %v1007_v32 = vpack.c.bf16 %v984_v25, %v981_v17  ;;  %v2726_v20 = vpop.f32.mrb[19].mxu1 }
 0x64a   : > { %2816 = vmatmul.mubr.msk.bf16.gmra.mrb[56].mxu1 %vm694_vm3, %v1007_v32 }
 0x64b   : > { %2819 = vmatprep.mubr.msk.bf16.mxu1 %vm3145_vm0, %v3144_v3 }
 0x64d   : > { %v989_v30 = vpop.f32.mrb[20].mxu1 }
 0x64e   : > { %v2729_v42 = vpop.f32.mrb[21].mxu1 }
 0x64f   : > { %v992_v34 = vpop.f32.mrb[22].mxu1 }
 0x650   : > { %v1008_v38 = vpack.c.bf16 %v992_v34, %v989_v30  ;;  %v2730_v46 = vpop.f32.mrb[23].mxu1 }
 0x652   : > { %2820 = vmatmul.mubr.msk.bf16.gmra.mrb[60].mxu1 %vm694_vm3, %v1008_v38 }
 0x653   : > { %2823 = vmatprep.mubr.msk.bf16.mxu1 %vm3145_vm0, %v3144_v3 }
 0x655   : > { %v997_v50 = vpop.f32.mrb[24].mxu1 }
 0x656   : > { %v2733_v31 = vpop.f32.mrb[25].mxu1  ;;  %v1009_v36 = vpack.c.bf16 %v997_v50, %v997_v50 }
 0x657   : > { %v1000_v28 = vpop.f32.mrb[26].mxu1 }
 0x658   : > { %v2734_v43 = vpop.f32.mrb[27].mxu1 }
 0x65a   : > { %2824 = vmatmul.mubr.msk.bf16.gmra.mrb[64].mxu1 %vm694_vm3, %v1009_v36 }
 0x65b   : > { %2855 = vmatprep.mubr.msk.bf16.mxu1 %vm3145_vm0, %v3144_v3 }
 0x694   : > { %v1292_v45 = vpop.f32.mrb[28].mxu1 }
 0x695   : > { %v2765_v47 = vpop.f32.mrb[29].mxu1 }
 0x696   : > { %v1295_v52 = vpop.f32.mrb[30].mxu1 }
 0x697   : > { %v1332_v41 = vpack.c.bf16 %v1295_v52, %v1292_v45  ;;  %v2766_v53 = vpop.f32.mrb[31].mxu1 }
 0x699   : > { %2786 = vmatmul.mubr.msk.bf16.vlgmr.msra.gmra.mrb[60].mxu0 %vm694_vm3, %v1332_v41 }
 0x69a   : > { %2828 = vmatpush3.bf16.xpose.msra.mxu0 %v1548_v55  ;;  %2789 = vmatprep.mubr.msk.bf16.mxu0 %vm3145_vm0, %v3144_v3 }
 0x69b   : > { %2829 = vmatprep.subr.bf16.mxu0 %v3144_v3 }
 0x69c   : > { %v1300_v57 = vpop.f32.mrb[32].mxu1 }
 0x69d   : > { %v2769_v58 = vpop.f32.mrb[33].mxu1 }
 0x69e   : > { %v1303_v4 = vpop.f32.mrb[34].mxu1 }
 0x69f   : > { %v1333_v0 = vpack.c.bf16 %v1303_v4, %v1300_v57  ;;  %v2770_v61 = vpop.f32.mrb[35].mxu1 }
 0x6a1   : > { %2790 = vmatmul.mubr.msk.bf16.gmra.mrb[64].mxu0 %vm694_vm3, %v1333_v0 }
 0x6a2   : > { %2830 = vmatpush3.bf16.xpose.msra.mxu0 %v1551_v62  ;;  %2793 = vmatprep.mubr.msk.bf16.mxu0 %vm3145_vm0, %v3144_v3 }
 0x6a3   : > { %2875 = vmatprep.subr.bf16.mxu0 %v3144_v3 }
 0x6a4   : > { %v1308_v63 = vpop.f32.mrb[36].mxu1 }
 0x6a5   : > { %v2773_v1 = vpop.f32.mrb[37].mxu1 }
 0x6a6   : > { %v1311_v5 = vpop.f32.mrb[38].mxu1 }
 0x6a7   : > { %v1334_v6 = vpack.c.bf16 %v1311_v5, %v1308_v63  ;;  %v2774_v29 = vpop.f32.mrb[39].mxu1 }
 0x6a9   : > { %2794 = vmatmul.mubr.msk.bf16.gmra.mrb[68].mxu0 %vm694_vm3, %v1334_v6 }
 0x6aa   : > { %2797 = vmatprep.mubr.msk.bf16.mxu0 %vm3145_vm0, %v3144_v3 }
 0x6ac   : > { %v1316_v11 = vpop.f32.mrb[40].mxu1 }
 0x6ad   : > { %v2777_v21 = vpop.f32.mrb[41].mxu1 }
 0x6ae   : > { %v1319_v8 = vpop.f32.mrb[42].mxu1 }
 0x6af   : > { %v1335_v14 = vpack.c.bf16 %v1319_v8, %v1316_v11  ;;  %v2778_v56 = vpop.f32.mrb[43].mxu1 }
 0x6b1   : > { %2798 = vmatmul.mubr.msk.bf16.gmra.mrb[72].mxu0 %vm694_vm3, %v1335_v14 }
 0x6b2   : > { %2801 = vmatprep.mubr.msk.bf16.mxu0 %vm3145_vm0, %v3144_v3 }
 0x6c3   : > { %v1324_v22 = vpop.f32.mrb[44].mxu1 }
 0x6c4   : > { %v1336_v10 = vpack.c.bf16 %v1324_v22, %v1324_v22  ;;  %v2781_v15 = vpop.f32.mrb[45].mxu1 }
 0x6c5   : > { %v1327_v39 = vpop.f32.mrb[46].mxu1 }
 0x6c6   : > { %v2782_v35 = vpop.f32.mrb[47].mxu1  ;;  %2802 = vmatmul.mubr.msk.bf16.gmra.mrb[76].mxu0 %vm694_vm3, %v1336_v10 }
 0x6c7   : > { %2831 = vmatprep.mubr.msk.bf16.mxu0 %vm3145_vm0, %v3144_v3 }
 0x6ce   : > { %2832 = vmatmul.mubr.msk.bf16.vlgmr.msra.gmra.mrb[80].mxu0 %vm694_vm3, %v1519_v40 }
 0x6cf   : > { %2835 = vmatprep.mubr.msk.bf16.mxu0 %vm3145_vm0, %v3144_v3 }
 0x6d6   : > { %2836 = vmatmul.mubr.msk.bf16.gmra.mrb[84].mxu0 %vm694_vm3, %v1521_v12 }
 0x6d7   : > { %2839 = vmatprep.mubr.msk.bf16.mxu0 %vm3145_vm0, %v3144_v3 }
 0x6de   : > { %2840 = vmatmul.mubr.msk.bf16.gmra.mrb[88].mxu0 %vm694_vm3, %v1523_v13 }
 0x6df   : > { %2843 = vmatprep.mubr.msk.bf16.mxu0 %vm3145_vm0, %v3144_v3 }
 0x6e6   : > { %2844 = vmatmul.mubr.msk.bf16.gmra.mrb[92].mxu0 %vm694_vm3, %v1525_v19 }
 0x6e7   : > { %2847 = vmatprep.mubr.msk.bf16.mxu0 %vm3145_vm0, %v3144_v3 }
 0x6ee   : > { %2848 = vmatmul.mubr.msk.bf16.gmra.mrb[96].mxu0 %vm694_vm3, %v1527_v24 }
 0x6ef   : > { %2877 = vmatprep.mubr.msk.bf16.mxu0 %vm3145_vm0, %v3144_v3 }
 0x70d   : > { %v1480_v16 = vpop.f32.mrb[48].mxu1 }
 0x70e   : > { %v2809_v27 = vpop.f32.mrb[49].mxu1 }
 0x70f   : > { %v1483_v18 = vpop.f32.mrb[50].mxu1 }
 0x710   : > { %v2810_v37 = vpop.f32.mrb[51].mxu1 }
 0x715   : > { %v1488_v51 = vpop.f32.mrb[52].mxu1 }
 0x716   : > { %v2813_v23 = vpop.f32.mrb[53].mxu1 }
 0x717   : > { %v1491_v17 = vpop.f32.mrb[54].mxu1 }
 0x718   : > { %v2814_v33 = vpop.f32.mrb[55].mxu1 }
 0x71d   : > { %v1496_v25 = vpop.f32.mrb[56].mxu1 }
 0x71e   : > { %v2817_v32 = vpop.f32.mrb[57].mxu1 }
 0x71f   : > { %v1499_v20 = vpop.f32.mrb[58].mxu1 }
 0x720   : > { %v2818_v30 = vpop.f32.mrb[59].mxu1 }
 0x725   : > { %v1504_v42 = vpop.f32.mrb[60].mxu1 }
 0x726   : > { %v2821_v34 = vpop.f32.mrb[61].mxu1 }
 0x727   : > { %v1507_v38 = vpop.f32.mrb[62].mxu1 }
 0x728   : > { %v2822_v46 = vpop.f32.mrb[63].mxu1 }
 0x72d   : > { %v1512_v50 = vpop.f32.mrb[64].mxu1 }
 0x72e   : > { %v2825_v31 = vpop.f32.mrb[65].mxu1 }
 0x72f   : > { %v1515_v28 = vpop.f32.mrb[66].mxu1 }
 0x730   : > { %v2826_v36 = vpop.f32.mrb[67].mxu1 }
 0x76c   : > { %v1390_v43 = vpop.f32.mrb[60].mxu0 }
 0x76d   : > { %v3735_v45 = vadd.f32 %v1480_v16, %v1390_v43  ;;  %v2787_v47 = vpop.f32.mrb[61].mxu0 }
 0x76e   : > { %v1393_v48 = vpop.f32.mrb[62].mxu0 }
 0x76f   : > { %v3737_v52 = vadd.f32 %v1483_v18, %v1393_v48  ;;  %v2788_v41 = vpop.f32.mrb[63].mxu0 }
 0x774   : > { %v1398_v53 = vpop.f32.mrb[64].mxu0 }
 0x775   : > { %v3739_v55 = vadd.f32 %v1488_v51, %v1398_v53  ;;  %v2791_v57 = vpop.f32.mrb[65].mxu0 }
 0x776   : > { %v1401_v58 = vpop.f32.mrb[66].mxu0 }
 0x777   : > { %v3741_v60 = vadd.f32 %v1491_v17, %v1401_v58  ;;  %v2792_v4 = vpop.f32.mrb[67].mxu0 }
 0x77c   : > { %v1406_v0 = vpop.f32.mrb[68].mxu0 }
 0x77d   : > { %v3743_v61 = vadd.f32 %v1496_v25, %v1406_v0  ;;  %v2795_v62 = vpop.f32.mrb[69].mxu0 }
 0x77e   : > { %v1409_v63 = vpop.f32.mrb[70].mxu0 }
 0x77f   : > { %v3745_v1 = vadd.f32 %v1499_v20, %v1409_v63  ;;  %v2796_v5 = vpop.f32.mrb[71].mxu0 }
 0x784   : > { %v1414_v6 = vpop.f32.mrb[72].mxu0 }
 0x785   : > { %v3747_v29 = vadd.f32 %v1504_v42, %v1414_v6  ;;  %v2799_v11 = vpop.f32.mrb[73].mxu0 }
 0x786   : > { %v1417_v21 = vpop.f32.mrb[74].mxu0 }
 0x787   : > { %v3749_v8 = vadd.f32 %v1507_v38, %v1417_v21  ;;  %v2800_v14 = vpop.f32.mrb[75].mxu0 }
 0x799   : > { %v1422_v56 = vpop.f32.mrb[76].mxu0 }
 0x79a   : > { %v3751_v22 = vadd.f32 %v1512_v50, %v1422_v56  ;;  %v2803_v10 = vpop.f32.mrb[77].mxu0 }
 0x79b   : > { %v1425_v15 = vpop.f32.mrb[78].mxu0 }
 0x79c   : > { %v2804_v39 = vpop.f32.mrb[79].mxu0 }
 0x7a1   : > { %v1587_v35 = vpop.f32.mrb[80].mxu0 }
 0x7a2   : > { %v1625_v40 = vmul.f32 0.35355338, %v1587_v35  ;;  %v2833_v12 = vpop.f32.mrb[81].mxu0 }
 0x7a3   : > { %v1590_v13 = vpop.f32.mrb[82].mxu0 }
 0x7a4   : > { %v1626_v19 = vmul.f32 0.35355338, %v1590_v13  ;;  %v2834_v24 = vpop.f32.mrb[83].mxu0  ;;  %v1634_v16 = vsel %vm797_vm4, %v1625_v40, -inf }
 0x7a5   : > { %1635 = vmax.xlane.f32.xlu0 %v1634_v16 }
 0x7a6   : > { %v1637_v27 = vsel %vm797_vm4, %v1626_v19, -inf }
 0x7a7   : > { %1638 = vmax.xlane.f32.xlu1 %v1637_v27 }
 0x7a9   : > { %v1595_v18 = vpop.f32.mrb[84].mxu0 }
 0x7aa   : > { %v1627_v37 = vmul.f32 0.35355338, %v1595_v18  ;;  %v2837_v51 = vpop.f32.mrb[85].mxu0 }
 0x7ab   : > { %v1598_v23 = vpop.f32.mrb[86].mxu0 }
 0x7ac   : > { %v1628_v17 = vmul.f32 0.35355338, %v1598_v23  ;;  %v2838_v33 = vpop.f32.mrb[87].mxu0  ;;  %v1640_v25 = vsel %vm797_vm4, %v1627_v37, -inf }
 0x7ad   : > { %1641 = vmax.xlane.f32.xlu0 %v1640_v25 }
 0x7ae   : > { %v1643_v32 = vsel %vm797_vm4, %v1628_v17, -inf }
 0x7b1   : > { %1644 = vmax.xlane.f32.xlu0 %v1643_v32  ;;  %v1603_v20 = vpop.f32.mrb[88].mxu0 }
 0x7b2   : > { %v1629_v30 = vmul.f32 0.35355338, %v1603_v20  ;;  %v2841_v42 = vpop.f32.mrb[89].mxu0 }
 0x7b3   : > { %v1606_v34 = vpop.f32.mrb[90].mxu0 }
 0x7b4   : > { %v3757_v38 = vmul.f32 0.35355338, %v1606_v34  ;;  %v2842_v46 = vpop.f32.mrb[91].mxu0  ;;  %v1646_v50 = vsel %vm797_vm4, %v1629_v30, -inf }
 0x7b5   : > { %1647 = vmax.xlane.f32.xlu0 %v1646_v50 }
 0x7b6   : > { %v1649_v31 = vsel %vm797_vm4, %v3757_v38, -inf }
 0x7b9   : > { %1650 = vmax.xlane.f32.xlu0 %v1649_v31  ;;  %v1611_v28 = vpop.f32.mrb[92].mxu0 }
 0x7ba   : > { %v1631_v36 = vmul.f32 0.35355338, %v1611_v28  ;;  %v2845_v43 = vpop.f32.mrb[93].mxu0 }
 0x7bb   : > { %v1614_v47 = vpop.f32.mrb[94].mxu0 }
 0x7bc   : > { %v3762_v48 = vmul.f32 0.35355338, %v1614_v47  ;;  %v2846_v41 = vpop.f32.mrb[95].mxu0  ;;  %v1652_v53 = vsel %vm797_vm4, %v1631_v36, -inf }
 0x7bd   : > { %1653 = vmax.xlane.f32.xlu0 %v1652_v53 }
 0x7be   : > { %v1655_v57 = vsel %vm797_vm4, %v3762_v48, -inf }
 0x7c1   : > { %1656 = vmax.xlane.f32.xlu0 %v1655_v57  ;;  %v1619_v58 = vpop.f32.mrb[96].mxu0 }
 0x7c2   : > { %v1633_v4 = vmul.f32 0.35355338, %v1619_v58  ;;  %v2849_v0 = vpop.f32.mrb[97].mxu0 }
 0x7c3   : > { %v1622_v62 = vpop.f32.mrb[98].mxu0 }
 0x7c4   : > { %v2850_v63 = vpop.f32.mrb[99].mxu0  ;;  %v1658_v5 = vsel %vm822_vm5, %v1633_v4, -inf }
 0x7c5   : > { %1659 = vmax.xlane.f32.xlu0 %v1658_v5 }
 0x832   : > { %v1636_v6 = vpop.xlane.xlu0 %1635 }
 0x833   : > { %v1661_v11 = vsub.f32 %v1625_v40, %v1636_v6 }
 0x834   : > { %v1639_v21 = vpop.xlane.xlu1 %1638 }
 0x835   : > { %v1670_v14 = vmul.f32 1.442695, %v1661_v11  ;;  %v1662_v56 = vsub.f32 %v1626_v19, %v1639_v21 }
 0x837   : > { %3064 = vpow2.f32 %v1670_v14  ;;  %v1672_v10 = vmul.f32 1.442695, %v1662_v56 }
 0x839   : > { %3066 = vpow2.f32 %v1672_v10 }
 0x83a   : > { %v1642_v15 = vpop.xlane.xlu0 %1641 }
 0x83b   : > { %v1663_v39 = vsub.f32 %v1627_v37, %v1642_v15 }
 0x83d   : > { %v1674_v35 = vmul.f32 1.442695, %v1663_v39 }
 0x83e   : > { %v1645_v12 = vpop.xlane.xlu0 %1644 }
 0x83f   : > { %3068 = vpow2.f32 %v1674_v35  ;;  %v1664_v13 = vsub.f32 %v1628_v17, %v1645_v12 }
 0x841   : > { %v3768_v24 = vpop.eup %3064  ;;  %v1676_v16 = vmul.f32 1.442695, %v1664_v13 }
 0x842   : > { %v1648_v27 = vpop.xlane.xlu0 %1647  ;;  %v1688_v18 = vsel %vm797_vm4, %v3768_v24, 0.0 }
 0x843   : > { %v3772_v40 = vpop.eup %3066  ;;  %3070 = vpow2.f32 %v1676_v16  ;;  %v1665_v19 = vsub.f32 %v1629_v30, %v1648_v27  ;;  %1689 = vadd.xlane.f32.xlu0 %v1688_v18 }
 0x844   : > { %v1691_v37 = vsel %vm797_vm4, %v3772_v40, 0.0 }
 0x845   : > { %v1678_v51 = vmul.f32 1.442695, %v1665_v19 }
 0x846   : > { %v1651_v30 = vpop.xlane.xlu0 %1650 }
 0x847   : > { %3072 = vpow2.f32 %v1678_v51  ;;  %1692 = vadd.xlane.f32.xlu0 %v1691_v37  ;;  %v1666_v46 = vsub.f32 %v3757_v38, %v1651_v30 }
 0x849   : > { %v3776_v23 = vpop.eup %3068  ;;  %v1680_v28 = vmul.f32 1.442695, %v1666_v46 }
 0x84a   : > { %v1694_v17 = vsel %vm797_vm4, %v3776_v23, 0.0  ;;  %v1654_v42 = vpop.xlane.xlu0 %1653 }
 0x84b   : > { %1695 = vadd.xlane.f32.xlu1 %v1694_v17  ;;  %v1667_v31 = vsub.f32 %v1631_v36, %v1654_v42  ;;  %3074 = vpow2.f32 %v1680_v28 }
 0x84d   : > { %v3780_v33 = vpop.eup %3070  ;;  %v1682_v47 = vmul.f32 1.442695, %v1667_v31 }
 0x84e   : > { %v1697_v25 = vsel %vm797_vm4, %v3780_v33, 0.0  ;;  %v1657_v34 = vpop.xlane.xlu0 %1656 }
 0x84f   : > { %1698 = vadd.xlane.f32.xlu0 %v1697_v25  ;;  %v1668_v41 = vsub.f32 %v3762_v48, %v1657_v34  ;;  %3076 = vpow2.f32 %v1682_v47 }
 0x851   : > { %v3784_v32 = vpop.eup %3072  ;;  %v1684_v57 = vmul.f32 1.442695, %v1668_v41  ;;  %v1833_v41 = vld [vmem:[%s4052_s8 + $0x10] sm:$0xff] }
 0x852   : > { %v1700_v20 = vsel %vm797_vm4, %v3784_v32, 0.0  ;;  %v1660_v50 = vpop.xlane.xlu0 %1659 }
 0x853   : > { %1701 = vadd.xlane.f32.xlu1 %v1700_v20  ;;  %v1669_v43 = vsub.f32 %v1633_v4, %v1660_v50 }
 0x855   : > { %v1686_v53 = vmul.f32 1.442695, %v1669_v43  ;;  %v3075_v58 = vpop.eup %3074 }
 0x856   : > { %v1703_v62 = vsel %vm797_vm4, %v3075_v58, 0.0 }
 0x857   : > { %3078 = vpow2.f32 %v1686_v53  ;;  %v1834_v53 = vpack.c.bf16 %v1833_v41, %v1833_v41 }
 0x858   : > { %3080 = vpow2.f32 %v1684_v57 }
 0x859   : > { %v3792_v0 = vpop.eup %3076 }
 0x85a   : > { %v1706_v38 = vsel %vm797_vm4, %v3792_v0, 0.0 }
 0x861   : > { %v3795_v63 = vpop.eup %3078 }
 0x862   : > { %v1712_v36 = vsel %vm822_vm5, %v3795_v63, 0.0  ;;  %v3801_v48 = vpop.eup %3080 }
 0x863   : > { %v1709_v4 = vsel %vm797_vm4, %v3801_v48, 0.0 }
 0x864   : > { %1738 = vrot.lane.b32.xlu1 %v3392_v7, %s3151_s12 }
 0x865   : > { %1740 = vrot.lane.b32.xlu0 %v3389_v2, %s3151_s12 }
 0x884   : > { %1704 = vadd.xlane.f32.xlu0 %v1703_v62 }
 0x888   : > { %1707 = vadd.xlane.f32.xlu0 %v1706_v38  ;;  %1713 = vadd.xlane.f32.xlu1 %v1712_v36 }
 0x88c   : > { %1710 = vadd.xlane.f32.xlu0 %v1709_v4 }
 0x899   : > { %1945 = vrot.lane.b32.xlu1 %v3387_v59, %s3152_s16 }
 0x8a2   : > { %1949 = vrot.lane.b32.xlu0 %v3392_v7, %s3152_s16 }
 0x8a6   : > { %1951 = vrot.lane.b32.xlu0 %v3389_v2, %s3152_s16 }
 0x8aa   : > { %1939 = vrot.lane.b32.xlu0 %v3381_v44, %s3152_s16 }
 0x8ae   : > { %1941 = vrot.lane.b32.xlu0 %v3383_v49, %s3152_s16 }
 0x8b2   : > { %1943 = vrot.lane.b32.xlu0 %v3385_v54, %s3152_s16 }
 0x8b6   : > { %1947 = vrot.lane.b32.xlu0 %v3400_v9, %s3152_s16 }
 0x8d0   : > { %v1690_v5 = vpop.xlane.xlu0 %1689 }
 0x8d4   : > { %v1693_v6 = vpop.xlane.xlu0 %1692 }
 0x8d5   : > { %3082 = vrcp.f32 %v1693_v6 }
 0x8d6   : > { %3084 = vrcp.f32 %v1690_v5 }
 0x8d8   : > { %v1696_v11 = vpop.xlane.xlu1 %1695 }
 0x8dc   : > { %v1699_v21 = vpop.xlane.xlu0 %1698 }
 0x8dd   : > { %3086 = vrcp.f32 %v1699_v21 }
 0x8de   : > { %3088 = vrcp.f32 %v1696_v11 }
 0x8df   : > { %v3083_v59 = vpop.eup %3082 }
 0x8e0   : > { %v1702_v14 = vpop.xlane.xlu1 %1701  ;;  %v1741_v56 = vpop.permute.xlu0 %1740  ;;  %v1718_v44 = vmul.f32 %v3083_v59, %v3772_v40 }
 0x8e1   : > { %v3085_v15 = vpop.eup %3084  ;;  %v1759_v49 = vand.u32 %v1741_v56, %v3599_v26  ;;  %3090 = vrcp.f32 %v1702_v14 }
 0x8e2   : > { %v1716_v54 = vmul.f32 %v3085_v15, %v3768_v24 }
 0x8e4   : > { %v1739_v10 = vpop.permute.xlu1 %1738  ;;  %v1733_v9 = vpack.c.bf16 %v1718_v44, %v1716_v54 }
 0x8e5   : > { %2852 = vmatpush3.bf16.msra.mxu1 %v1739_v10 }
 0x8e6   : > { %2853 = vmatprep.subr.bf16.mxu1 %v3144_v3 }
 0x8e7   : > { %v3087_v39 = vpop.eup %3086 }
 0x8e8   : > { %v3089_v35 = vpop.eup %3088  ;;  %v1722_v12 = vmul.f32 %v3087_v39, %v3780_v33 }
 0x8e9   : > { %2854 = vmatpush3.bf16.msra.mxu1 %v1759_v49  ;;  %v1720_v13 = vmul.f32 %v3089_v35, %v3776_v23 }
 0x8ea   : > { %2897 = vmatprep.subr.bf16.mxu1 %v3144_v3 }
 0x8eb   : > { %v1734_v16 = vpack.c.bf16 %v1722_v12, %v1720_v13  ;;  %v3091_v40 = vpop.eup %3090 }
 0x8ec   : > { %2856 = vmatmul.mubr.msk.bf16.vlgmr.msra.gmra.mrb[68].mxu1 %vm797_vm4, %v1733_v9  ;;  %v1724_v17 = vmul.f32 %v3091_v40, %v3784_v32 }
 0x8ed   : > { %2859 = vmatprep.mubr.msk.bf16.mxu1 %vm3145_vm0, %v3144_v3 }
 0x8f4   : > { %2860 = vmatmul.mubr.msk.bf16.gmra.mrb[72].mxu1 %vm797_vm4, %v1734_v16 }
 0x8f5   : > { %2863 = vmatprep.mubr.msk.bf16.mxu1 %vm3145_vm0, %v3144_v3 }
 0x911   : > { %v1705_v24 = vpop.xlane.xlu0 %1704 }
 0x912   : > { %3092 = vrcp.f32 %v1705_v24 }
 0x915   : > { %v1708_v27 = vpop.xlane.xlu0 %1707  ;;  %v1714_v19 = vpop.xlane.xlu1 %1713 }
 0x916   : > { %3094 = vrcp.f32 %v1708_v27 }
 0x919   : > { %v1711_v18 = vpop.xlane.xlu0 %1710  ;;  %v1946_v62 = vpop.permute.xlu1 %1945 }
 0x91a   : > { %3096 = vrcp.f32 %v1711_v18 }
 0x91b   : > { %3098 = vrcp.f32 %v1714_v19 }
 0x91c   : > { %v3093_v51 = vpop.eup %3092 }
 0x91d   : > { %v1950_v37 = vpop.permute.xlu0 %1949  ;;  %v1726_v23 = vmul.f32 %v3093_v51, %v3075_v58  ;;  %v1856_v58 = vsel %vm1352_vm7, %v1834_v53, 0 }
 0x91e   : > { %v1969_v33 = vsel %vm694_vm3, %v1950_v37, 0  ;;  %2876 = vmatpush3.bf16.msra.mxu0 %v1856_v58 }
 0x91f   : > { %2898 = vmatpush3.bf16.xpose.msra.mxu1 %v1969_v33  ;;  %v1735_v25 = vpack.c.bf16 %v1726_v23, %v1724_v17  ;;  %2921 = vmatprep.subr.bf16.mxu0 %v3144_v3 }
 0x920   : > { %2899 = vmatprep.subr.bf16.mxu1 %v3144_v3  ;;  %v3095_v20 = vpop.eup %3094 }
 0x921   : > { %2864 = vmatmul.mubr.msk.bf16.gmra.mrb[76].mxu1 %vm797_vm4, %v1735_v25  ;;  %v1952_v30 = vpop.permute.xlu0 %1951  ;;  %v1728_v34 = vmul.f32 %v3095_v20, %v3792_v0 }
 0x922   : > { %2867 = vmatprep.mubr.msk.bf16.mxu1 %vm3145_vm0, %v3144_v3  ;;  %v1972_v46 = vsel %vm694_vm3, %v1952_v30, 0 }
 0x924   : > { %v3097_v42 = vpop.eup %3096 }
 0x925   : > { %v1730_v32 = vmul.f32 %v3097_v42, %v3801_v48  ;;  %v3099_v31 = vpop.eup %3098  ;;  %v1940_v47 = vpop.permute.xlu0 %1939 }
 0x926   : > { %v1732_v28 = vmul.f32 %v3099_v31, %v3795_v63 }
 0x927   : > { %2900 = vmatpush3.bf16.xpose.msra.mxu1 %v1972_v46  ;;  %v1736_v50 = vpack.c.bf16 %v1730_v32, %v1728_v34 }
 0x928   : > { %2945 = vmatprep.subr.bf16.mxu1 %v3144_v3  ;;  %v1737_v43 = vpack.c.bf16 %v1732_v28, %v1732_v28 }
 0x929   : > { %2868 = vmatmul.mubr.msk.bf16.gmra.mrb[80].mxu1 %vm797_vm4, %v1736_v50  ;;  %v1942_v57 = vpop.permute.xlu0 %1941 }
 0x92a   : > { %2871 = vmatprep.mubr.msk.bf16.mxu1 %vm3145_vm0, %v3144_v3 }
 0x92d   : > { %v1944_v0 = vpop.permute.xlu0 %1943 }
 0x931   : > { %2872 = vmatmul.mubr.msk.bf16.gmra.mrb[84].mxu1 %vm797_vm4, %v1737_v43  ;;  %v1948_v63 = vpop.permute.xlu0 %1947 }
 0x932   : > { %2901 = vmatprep.mubr.msk.bf16.mxu1 %vm3145_vm0, %v3144_v3 }
 0x939   : > { %2902 = vmatmul.mubr.msk.bf16.vlgmr.msra.gmra.mrb[88].mxu1 %vm694_vm3, %v1940_v47 }
 0x93a   : > { %2905 = vmatprep.mubr.msk.bf16.mxu1 %vm3145_vm0, %v3144_v3 }
 0x941   : > { %2906 = vmatmul.mubr.msk.bf16.gmra.mrb[92].mxu1 %vm694_vm3, %v1942_v57 }
 0x942   : > { %2909 = vmatprep.mubr.msk.bf16.mxu1 %vm3145_vm0, %v3144_v3 }
 0x949   : > { %2910 = vmatmul.mubr.msk.bf16.gmra.mrb[96].mxu1 %vm694_vm3, %v1944_v0 }
 0x94a   : > { %2913 = vmatprep.mubr.msk.bf16.mxu1 %vm3145_vm0, %v3144_v3 }
 0x951   : > { %2914 = vmatmul.mubr.msk.bf16.gmra.mrb[100].mxu1 %vm694_vm3, %v1946_v62 }
 0x952   : > { %2917 = vmatprep.mubr.msk.bf16.mxu1 %vm3145_vm0, %v3144_v3 }
 0x959   : > { %2918 = vmatmul.mubr.msk.bf16.gmra.mrb[104].mxu1 %vm694_vm3, %v1948_v63 }
 0x95a   : > { %2947 = vmatprep.mubr.msk.bf16.mxu1 %vm3145_vm0, %v3144_v3 }
 0x9bf   : > { %v1795_v38 = vpop.f32.mrb[68].mxu1 }
 0x9c0   : > { %v2857_v36 = vpop.f32.mrb[69].mxu1 }
 0x9c1   : > { %v1798_v48 = vpop.f32.mrb[70].mxu1 }
 0x9c2   : > { %v1835_v4 = vpack.c.bf16 %v1798_v48, %v1795_v38  ;;  %v2858_v5 = vpop.f32.mrb[71].mxu1 }
 0x9c4   : > { %2878 = vmatmul.mubr.msk.bf16.vlgmr.msra.gmra.mrb[100].mxu0 %vm694_vm3, %v1835_v4 }
 0x9c5   : > { %2881 = vmatprep.mubr.msk.bf16.mxu0 %vm3145_vm0, %v3144_v3 }
 0x9c7   : > { %v1803_v6 = vpop.f32.mrb[72].mxu1 }
 0x9c8   : > { %v2861_v11 = vpop.f32.mrb[73].mxu1 }
 0x9c9   : > { %v1806_v21 = vpop.f32.mrb[74].mxu1 }
 0x9ca   : > { %v1836_v14 = vpack.c.bf16 %v1806_v21, %v1803_v6  ;;  %v2862_v59 = vpop.f32.mrb[75].mxu1 }
 0x9cc   : > { %2882 = vmatmul.mubr.msk.bf16.gmra.mrb[104].mxu0 %vm694_vm3, %v1836_v14 }
 0x9cd   : > { %2885 = vmatprep.mubr.msk.bf16.mxu0 %vm3145_vm0, %v3144_v3 }
 0x9f4   : > { %v1811_v56 = vpop.f32.mrb[76].mxu1 }
 0x9f5   : > { %v2865_v10 = vpop.f32.mrb[77].mxu1 }
 0x9f6   : > { %v1814_v15 = vpop.f32.mrb[78].mxu1 }
 0x9f7   : > { %v1837_v44 = vpack.c.bf16 %v1814_v15, %v1811_v56  ;;  %v2866_v49 = vpop.f32.mrb[79].mxu1 }
 0x9f9   : > { %2886 = vmatmul.mubr.msk.bf16.gmra.mrb[108].mxu0 %vm694_vm3, %v1837_v44 }
 0x9fa   : > { %2889 = vmatprep.mubr.msk.bf16.mxu0 %vm3145_vm0, %v3144_v3 }
 0x9fc   : > { %v1819_v54 = vpop.f32.mrb[80].mxu1 }
 0x9fd   : > { %v2869_v9 = vpop.f32.mrb[81].mxu1 }
 0x9fe   : > { %v1822_v39 = vpop.f32.mrb[82].mxu1 }
 0x9ff   : > { %v1838_v35 = vpack.c.bf16 %v1822_v39, %v1819_v54  ;;  %v2870_v12 = vpop.f32.mrb[83].mxu1 }
 0xa01   : > { %2890 = vmatmul.mubr.msk.bf16.gmra.mrb[112].mxu0 %vm694_vm3, %v1838_v35 }
 0xa02   : > { %2893 = vmatprep.mubr.msk.bf16.mxu0 %vm3145_vm0, %v3144_v3 }
 0xa04   : > { %v1827_v13 = vpop.f32.mrb[84].mxu1 }
 0xa05   : > { %v2873_v16 = vpop.f32.mrb[85].mxu1  ;;  %v1839_v27 = vpack.c.bf16 %v1827_v13, %v1827_v13 }
 0xa06   : > { %v1830_v24 = vpop.f32.mrb[86].mxu1 }
 0xa07   : > { %v2874_v18 = vpop.f32.mrb[87].mxu1 }
 0xa09   : > { %2894 = vmatmul.mubr.msk.bf16.gmra.mrb[116].mxu0 %vm694_vm3, %v1839_v27 }
 0xa0a   : > { %2925 = vmatprep.mubr.msk.bf16.mxu0 %vm3145_vm0, %v3144_v3 }
 0xa0c   : > { %v2008_v40 = vpop.f32.mrb[88].mxu1 }
 0xa0d   : > { %v2046_v19 = vmul.f32 0.35355338, %v2008_v40  ;;  %v2903_v51 = vpop.f32.mrb[89].mxu1 }
 0xa0e   : > { %v2011_v37 = vpop.f32.mrb[90].mxu1 }
 0xa0f   : > { %v2047_v17 = vmul.f32 0.35355338, %v2011_v37  ;;  %v2904_v23 = vpop.f32.mrb[91].mxu1  ;;  %v2055_v33 = vsel %vm797_vm4, %v2046_v19, -inf }
 0xa10   : > { %2056 = vmax.xlane.f32.xlu0 %v2055_v33 }
 0xa11   : > { %v2058_v25 = vsel %vm797_vm4, %v2047_v17, -inf }
 0xa12   : > { %2059 = vmax.xlane.f32.xlu1 %v2058_v25 }
 0xa14   : > { %v2016_v20 = vpop.f32.mrb[92].mxu1 }
 0xa15   : > { %v2048_v30 = vmul.f32 0.35355338, %v2016_v20  ;;  %v2907_v42 = vpop.f32.mrb[93].mxu1 }
 0xa16   : > { %v2019_v34 = vpop.f32.mrb[94].mxu1 }
 0xa17   : > { %v2049_v32 = vmul.f32 0.35355338, %v2019_v34  ;;  %v2908_v46 = vpop.f32.mrb[95].mxu1  ;;  %v2061_v50 = vsel %vm797_vm4, %v2048_v30, -inf }
 0xa18   : > { %2062 = vmax.xlane.f32.xlu0 %v2061_v50 }
 0xa19   : > { %v2064_v31 = vsel %vm797_vm4, %v2049_v32, -inf }
 0xa1c   : > { %2065 = vmax.xlane.f32.xlu0 %v2064_v31  ;;  %v2024_v28 = vpop.f32.mrb[96].mxu1 }
 0xa1d   : > { %v2050_v43 = vmul.f32 0.35355338, %v2024_v28  ;;  %v2911_v47 = vpop.f32.mrb[97].mxu1 }
 0xa1e   : > { %v2027_v41 = vpop.f32.mrb[98].mxu1 }
 0xa1f   : > { %v3881_v53 = vmul.f32 0.35355338, %v2027_v41  ;;  %v2912_v57 = vpop.f32.mrb[99].mxu1  ;;  %v2067_v58 = vsel %vm797_vm4, %v2050_v43, -inf }
 0xa20   : > { %2068 = vmax.xlane.f32.xlu0 %v2067_v58 }
 0xa21   : > { %v2070_v0 = vsel %vm797_vm4, %v3881_v53, -inf }
 0xa24   : > { %2071 = vmax.xlane.f32.xlu0 %v2070_v0  ;;  %v2032_v62 = vpop.f32.mrb[100].mxu1 }
 0xa25   : > { %v3886_v63 = vmul.f32 0.35355338, %v2032_v62  ;;  %v2915_v38 = vpop.f32.mrb[101].mxu1 }
 0xa26   : > { %v2035_v36 = vpop.f32.mrb[102].mxu1 }
 0xa27   : > { %v3888_v48 = vmul.f32 0.35355338, %v2035_v36  ;;  %v2916_v4 = vpop.f32.mrb[103].mxu1  ;;  %v2073_v5 = vsel %vm797_vm4, %v3886_v63, -inf }
 0xa28   : > { %2074 = vmax.xlane.f32.xlu0 %v2073_v5 }
 0xa29   : > { %v2076_v6 = vsel %vm797_vm4, %v3888_v48, -inf }
 0xa2a   : > { %2077 = vmax.xlane.f32.xlu1 %v2076_v6 }
 0xa2c   : > { %v2040_v11 = vpop.f32.mrb[104].mxu1 }
 0xa2d   : > { %v3894_v21 = vmul.f32 0.35355338, %v2040_v11  ;;  %v2919_v14 = vpop.f32.mrb[105].mxu1 }
 0xa2e   : > { %v2043_v59 = vpop.f32.mrb[106].mxu1 }
 0xa2f   : > { %v2920_v56 = vpop.f32.mrb[107].mxu1  ;;  %v2079_v10 = vsel %vm822_vm5, %v3894_v21, -inf }
 0xa30   : > { %2080 = vmax.xlane.f32.xlu0 %v2079_v10 }
 0xa97   : > { %v1892_v15 = vpop.f32.mrb[100].mxu0 }
 0xa98   : > { %v3899_v44 = vadd.f32 %v1892_v15, %v3735_v45  ;;  %v2879_v49 = vpop.f32.mrb[101].mxu0 }
 0xa99   : > { %v1895_v54 = vpop.f32.mrb[102].mxu0 }
 0xa9a   : > { %v3902_v9 = vadd.f32 %v1895_v54, %v3737_v52  ;;  %v2880_v39 = vpop.f32.mrb[103].mxu0 }
 0xa9d   : > { %v2057_v35 = vpop.xlane.xlu0 %2056 }
 0xa9e   : > { %v2082_v12 = vsub.f32 %v2046_v19, %v2057_v35 }
 0xa9f   : > { %v2060_v13 = vpop.xlane.xlu1 %2059  ;;  %v1900_v16 = vpop.f32.mrb[104].mxu0 }
 0xaa0   : > { %v2091_v24 = vmul.f32 1.442695, %v2082_v12  ;;  %v2083_v27 = vsub.f32 %v2047_v17, %v2060_v13  ;;  %v3905_v18 = vadd.f32 %v1900_v16, %v3739_v55  ;;  %v2883_v40 = vpop.f32.mrb[105].mxu0 }
 0xaa1   : > { %v1903_v51 = vpop.f32.mrb[106].mxu0 }
 0xaa2   : > { %3100 = vpow2.f32 %v2091_v24  ;;  %v2093_v45 = vmul.f32 1.442695, %v2083_v27  ;;  %v3908_v37 = vadd.f32 %v1903_v51, %v3741_v60  ;;  %v2884_v23 = vpop.f32.mrb[107].mxu0 }
 0xaa4   : > { %3102 = vpow2.f32 %v2093_v45 }
 0xaa5   : > { %v2063_v52 = vpop.xlane.xlu0 %2062 }
 0xaa6   : > { %v2084_v33 = vsub.f32 %v2048_v30, %v2063_v52 }
 0xaa8   : > { %v2095_v25 = vmul.f32 1.442695, %v2084_v33 }
 0xaa9   : > { %v2066_v19 = vpop.xlane.xlu0 %2065 }
 0xaaa   : > { %3104 = vpow2.f32 %v2095_v25  ;;  %v2085_v20 = vsub.f32 %v2049_v32, %v2066_v19 }
 0xaac   : > { %v3910_v42 = vpop.eup %3100  ;;  %v2097_v17 = vmul.f32 1.442695, %v2085_v20 }
 0xaad   : > { %v2069_v55 = vpop.xlane.xlu0 %2068  ;;  %v2109_v34 = vsel %vm797_vm4, %v3910_v42, 0.0 }
 0xaae   : > { %v3914_v46 = vpop.eup %3102  ;;  %3106 = vpow2.f32 %v2097_v17  ;;  %v2086_v60 = vsub.f32 %v2050_v43, %v2069_v55  ;;  %2110 = vadd.xlane.f32.xlu1 %v2109_v34 }
 0xaaf   : > { %v2112_v50 = vsel %vm797_vm4, %v3914_v46, 0.0 }
 0xab0   : > { %v2099_v30 = vmul.f32 1.442695, %v2086_v60  ;;  %2113 = vadd.xlane.f32.xlu0 %v2112_v50 }
 0xab1   : > { %v2072_v31 = vpop.xlane.xlu0 %2071 }
 0xab2   : > { %3108 = vpow2.f32 %v2099_v30  ;;  %v2087_v32 = vsub.f32 %v3881_v53, %v2072_v31 }
 0xab4   : > { %v3919_v28 = vpop.eup %3104  ;;  %v2101_v47 = vmul.f32 1.442695, %v2087_v32 }
 0xab5   : > { %v2075_v41 = vpop.xlane.xlu0 %2074  ;;  %v2115_v57 = vsel %vm797_vm4, %v3919_v28, 0.0 }
 0xab6   : > { %3110 = vpow2.f32 %v2101_v47  ;;  %v2088_v43 = vsub.f32 %v3886_v63, %v2075_v41  ;;  %2116 = vadd.xlane.f32.xlu1 %v2115_v57 }
 0xab7   : > { %v2078_v58 = vpop.xlane.xlu1 %2077 }
 0xab8   : > { %v3924_v0 = vpop.eup %3106  ;;  %v2103_v62 = vmul.f32 1.442695, %v2088_v43  ;;  %v2089_v38 = vsub.f32 %v3888_v48, %v2078_v58 }
 0xab9   : > { %v2118_v53 = vsel %vm797_vm4, %v3924_v0, 0.0 }
 0xaba   : > { %3112 = vpow2.f32 %v2103_v62  ;;  %v2105_v36 = vmul.f32 1.442695, %v2089_v38  ;;  %2119 = vadd.xlane.f32.xlu0 %v2118_v53 }
 0xabc   : > { %v3929_v4 = vpop.eup %3108  ;;  %3114 = vpow2.f32 %v2105_v36 }
 0xabd   : > { %v2121_v5 = vsel %vm797_vm4, %v3929_v4, 0.0  ;;  %v2081_v27 = vpop.xlane.xlu0 %2080 }
 0xabe   : > { %2122 = vadd.xlane.f32.xlu1 %v2121_v5  ;;  %v2090_v51 = vsub.f32 %v3894_v21, %v2081_v27 }
 0xac0   : > { %v3933_v63 = vpop.eup %3110 }
 0xac1   : > { %v2124_v6 = vsel %vm797_vm4, %v3933_v63, 0.0 }
 0xac2   : > { %2125 = vadd.xlane.f32.xlu0 %v2124_v6 }
 0xac4   : > { %v3937_v48 = vpop.eup %3112 }
 0xac5   : > { %v2127_v11 = vsel %vm797_vm4, %v3937_v48, 0.0 }
 0xac6   : > { %v3941_v14 = vpop.eup %3114  ;;  %2128 = vadd.xlane.f32.xlu0 %v2127_v11 }
 0xac7   : > { %v2130_v59 = vsel %vm797_vm4, %v3941_v14, 0.0 }
 0xaca   : > { %2131 = vadd.xlane.f32.xlu0 %v2130_v59 }
 0xacc   : > { %v1908_v56 = vpop.f32.mrb[108].mxu0 }
 0xacd   : > { %v3946_v10 = vadd.f32 %v1908_v56, %v3743_v61  ;;  %v2887_v15 = vpop.f32.mrb[109].mxu0  ;;  %v2254_v56 = vld [vmem:[%s4052_s8 + $0x18] sm:$0xff] }
 0xace   : > { %v1911_v49 = vpop.f32.mrb[110].mxu0 }
 0xacf   : > { %v3949_v54 = vadd.f32 %v1911_v49, %v3745_v1  ;;  %2159 = vrot.lane.b32.xlu1 %v3392_v7, %s3153_s20  ;;  %v2888_v39 = vpop.f32.mrb[111].mxu0 }
 0xad4   : > { %v1916_v35 = vpop.f32.mrb[112].mxu0 }
 0xad5   : > { %v3953_v12 = vadd.f32 %v1916_v35, %v3747_v29  ;;  %v2891_v13 = vpop.f32.mrb[113].mxu0  ;;  %v2107_v29 = vmul.f32 1.442695, %v2090_v51 }
 0xad6   : > { %v1919_v16 = vpop.f32.mrb[114].mxu0 }
 0xad7   : > { %v3956_v24 = vadd.f32 %v1919_v16, %v3749_v8  ;;  %v2892_v61 = vpop.f32.mrb[115].mxu0  ;;  %3116 = vpow2.f32 %v2107_v29 }
 0xadc   : > { %v1924_v40 = vpop.f32.mrb[116].mxu0 }
 0xadd   : > { %v3960_v1 = vadd.f32 %v1924_v40, %v3751_v22  ;;  %v2895_v45 = vpop.f32.mrb[117].mxu0 }
 0xade   : > { %v1927_v7 = vpop.f32.mrb[118].mxu0 }
 0xadf   : > { %v2896_v23 = vpop.f32.mrb[119].mxu0 }
 0xae0   : > { %2161 = vrot.lane.b32.xlu0 %v3389_v2, %s3153_s20 }
 0xae1   : > { %v3117_v52 = vpop.eup %3116 }
 0xae2   : > { %v2133_v33 = vsel %vm822_vm5, %v3117_v52, 0.0 }
 0xaf3   : > { %2134 = vadd.xlane.f32.xlu1 %v2133_v33 }
 0xb3b   : > { %v2111_v8 = vpop.xlane.xlu1 %2110 }
 0xb3d   : > { %v2114_v25 = vpop.xlane.xlu0 %2113 }
 0xb3e   : > { %3118 = vrcp.f32 %v2114_v25 }
 0xb3f   : > { %3120 = vrcp.f32 %v2111_v8 }
 0xb43   : > { %v2117_v19 = vpop.xlane.xlu1 %2116 }
 0xb47   : > { %v2120_v20 = vpop.xlane.xlu0 %2119 }
 0xb48   : > { %3122 = vrcp.f32 %v2120_v20  ;;  %v3119_v34 = vpop.eup %3118 }
 0xb49   : > { %3124 = vrcp.f32 %v2117_v19  ;;  %v3121_v60 = vpop.eup %3120  ;;  %v2139_v50 = vmul.f32 %v3119_v34, %v3914_v46 }
 0xb4a   : > { %v2137_v32 = vmul.f32 %v3121_v60, %v3910_v42  ;;  %v2531_v60 = vld [vmem:[%s4053_s9] ss:$0 sm:$0xff] }
 0xb4b   : > { %v2123_v17 = vpop.xlane.xlu1 %2122 }
 0xb4c   : > { %v2154_v47 = vpack.c.bf16 %v2139_v50, %v2137_v32 }
 0xb4f   : > { %v2160_v21 = vpop.permute.xlu1 %2159  ;;  %v2126_v22 = vpop.xlane.xlu0 %2125 }
 0xb50   : > { %2922 = vmatpush3.bf16.msra.mxu0 %v2160_v21  ;;  %3126 = vrcp.f32 %v2126_v22 }
 0xb51   : > { %2923 = vmatprep.subr.bf16.mxu0 %v3144_v3  ;;  %3128 = vrcp.f32 %v2123_v17 }
 0xb52   : > { %v3123_v41 = vpop.eup %3122 }
 0xb53   : > { %v2129_v55 = vpop.xlane.xlu0 %2128  ;;  %v3125_v57 = vpop.eup %3124  ;;  %v2143_v43 = vmul.f32 %v3123_v41, %v3924_v0 }
 0xb54   : > { %v2141_v46 = vmul.f32 %v3125_v57, %v3919_v28 }
 0xb56   : > { %v2155_v58 = vpack.c.bf16 %v2143_v43, %v2141_v46 }
 0xb57   : > { %v2132_v2 = vpop.xlane.xlu0 %2131 }
 0xb58   : > { %3130 = vrcp.f32 %v2132_v2 }
 0xb59   : > { %3132 = vrcp.f32 %v2129_v55 }
 0xb5b   : > { %v2162_v30 = vpop.permute.xlu0 %2161 }
 0xb5c   : > { %v2180_v31 = vand.u32 %v2162_v30, %v3599_v26  ;;  %v3127_v26 = vpop.eup %3126 }
 0xb5d   : > { %v3129_v42 = vpop.eup %3128  ;;  %v2147_v62 = vmul.f32 %v3127_v26, %v3933_v63 }
 0xb5e   : > { %2924 = vmatpush3.bf16.msra.mxu0 %v2180_v31  ;;  %v2145_v38 = vmul.f32 %v3129_v42, %v3929_v4 }
 0xb60   : > { %v2156_v53 = vpack.c.bf16 %v2147_v62, %v2145_v38 }
 0xb61   : > { %2926 = vmatmul.mubr.msk.bf16.vlgmr.msra.gmra.mrb[120].mxu0 %vm797_vm4, %v2154_v47 }
 0xb62   : > { %2929 = vmatprep.mubr.msk.bf16.mxu0 %vm3145_vm0, %v3144_v3  ;;  %v3131_v36 = vpop.eup %3130 }
 0xb63   : > { %v3133_v0 = vpop.eup %3132  ;;  %v2151_v28 = vmul.f32 %v3131_v36, %v3941_v14  ;;  %v2255_v14 = vpack.c.bf16 %v2254_v56, %v2254_v56 }
 0xb64   : > { %v2149_v5 = vmul.f32 %v3133_v0, %v3937_v48 }
 0xb65   : > { %v2277_v48 = vsel %vm1352_vm7, %v2255_v14, 0 }
 0xb66   : > { %v2157_v6 = vpack.c.bf16 %v2151_v28, %v2149_v5  ;;  %2946 = vmatpush3.bf16.msra.mxu1 %v2277_v48 }
 0xb69   : > { %2930 = vmatmul.mubr.msk.bf16.gmra.mrb[124].mxu0 %vm797_vm4, %v2155_v58 }
 0xb6a   : > { %2933 = vmatprep.mubr.msk.bf16.mxu0 %vm3145_vm0, %v3144_v3 }
 0xb71   : > { %2934 = vmatmul.mubr.msk.bf16.gmra.mrb[128].mxu0 %vm797_vm4, %v2156_v53 }
 0xb72   : > { %2937 = vmatprep.mubr.msk.bf16.mxu0 %vm3145_vm0, %v3144_v3 }
 0xb79   : > { %2938 = vmatmul.mubr.msk.bf16.gmra.mrb[132].mxu0 %vm797_vm4, %v2157_v6 }
 0xb7a   : > { %2941 = vmatprep.mubr.msk.bf16.mxu0 %vm3145_vm0, %v3144_v3 }
 0xb80   : > { %v2135_v63 = vpop.xlane.xlu1 %2134 }
 0xb81   : > { %3134 = vrcp.f32 %v2135_v63 }
 0xb8b   : > { %v3135_v4 = vpop.eup %3134 }
 0xb8c   : > { %v2153_v11 = vmul.f32 %v3135_v4, %v3117_v52 }
 0xb8e   : > { %v2158_v59 = vpack.c.bf16 %v2153_v11, %v2153_v11 }
 0xb90   : > { %2942 = vmatmul.mubr.msk.bf16.gmra.mrb[136].mxu0 %vm797_vm4, %v2158_v59 }
 0xc34   : > { %v2216_v15 = vpop.f32.mrb[120].mxu0 }
 0xc35   : > { %v2927_v49 = vpop.f32.mrb[121].mxu0 }
 0xc36   : > { %v2219_v39 = vpop.f32.mrb[122].mxu0 }
 0xc37   : > { %v2256_v35 = vpack.c.bf16 %v2219_v39, %v2216_v15  ;;  %v2928_v13 = vpop.f32.mrb[123].mxu0 }
 0xc39   : > { %2948 = vmatmul.mubr.msk.bf16.vlgmr.msra.gmra.mrb[108].mxu1 %vm694_vm3, %v2256_v35 }
 0xc3a   : > { %2951 = vmatprep.mubr.msk.bf16.mxu1 %vm3145_vm0, %v3144_v3 }
 0xc3c   : > { %v2224_v16 = vpop.f32.mrb[124].mxu0 }
 0xc3d   : > { %v2931_v61 = vpop.f32.mrb[125].mxu0 }
 0xc3e   : > { %v2227_v27 = vpop.f32.mrb[126].mxu0 }
 0xc3f   : > { %v2257_v40 = vpack.c.bf16 %v2227_v27, %v2224_v16  ;;  %v2932_v51 = vpop.f32.mrb[127].mxu0 }
 0xc41   : > { %2952 = vmatmul.mubr.msk.bf16.gmra.mrb[112].mxu1 %vm694_vm3, %v2257_v40 }
 0xc42   : > { %2955 = vmatprep.mubr.msk.bf16.mxu1 %vm3145_vm0, %v3144_v3 }
 0xc44   : > { %v2232_v45 = vpop.f32.mrb[128].mxu0 }
 0xc45   : > { %v2935_v7 = vpop.f32.mrb[129].mxu0 }
 0xc46   : > { %v2235_v23 = vpop.f32.mrb[130].mxu0 }
 0xc47   : > { %v2258_v29 = vpack.c.bf16 %v2235_v23, %v2232_v45  ;;  %v2936_v52 = vpop.f32.mrb[131].mxu0 }
 0xc49   : > { %2956 = vmatmul.mubr.msk.bf16.gmra.mrb[116].mxu1 %vm694_vm3, %v2258_v29 }
 0xc4a   : > { %2959 = vmatprep.mubr.msk.bf16.mxu1 %vm3145_vm0, %v3144_v3 }
 0xc4c   : > { %v2240_v33 = vpop.f32.mrb[132].mxu0 }
 0xc4d   : > { %v2939_v8 = vpop.f32.mrb[133].mxu0 }
 0xc4e   : > { %v2243_v25 = vpop.f32.mrb[134].mxu0 }
 0xc4f   : > { %v2259_v19 = vpack.c.bf16 %v2243_v25, %v2240_v33  ;;  %v2940_v20 = vpop.f32.mrb[135].mxu0 }
 0xc51   : > { %2960 = vmatmul.mubr.msk.bf16.gmra.mrb[120].mxu1 %vm694_vm3, %v2259_v19 }
 0xc52   : > { %2963 = vmatprep.mubr.msk.bf16.mxu1 %vm3145_vm0, %v3144_v3 }
 0xc63   : > { %v2248_v17 = vpop.f32.mrb[136].mxu0 }
 0xc64   : > { %v2260_v21 = vpack.c.bf16 %v2248_v17, %v2248_v17  ;;  %v2943_v22 = vpop.f32.mrb[137].mxu0 }
 0xc65   : > { %v2251_v55 = vpop.f32.mrb[138].mxu0 }
 0xc66   : > { %v2944_v2 = vpop.f32.mrb[139].mxu0  ;;  %2964 = vmatmul.mubr.msk.bf16.gmra.mrb[124].mxu1 %vm694_vm3, %v2260_v21 }
 0xd0c   : > { %v2313_v34 = vpop.f32.mrb[108].mxu1 }
 0xd0d   : > { %v2351_v50 = vadd.f32 %v2313_v34, %v3899_v44  ;;  %v2949_v30 = vpop.f32.mrb[109].mxu1 }
 0xd0e   : > { %v2316_v3 = vpop.f32.mrb[110].mxu1 }
 0xd0f   : > { %v2367_v31 = vadd.f32 %v2531_v60, %v2351_v50  ;;  %v2352_v32 = vadd.f32 %v2316_v3, %v3902_v9  ;;  %v2950_v47 = vpop.f32.mrb[111].mxu1 }
 0xd11   : > { %2376 = vst.msk [vmem:[%s4013_s26] sm:$0xff] %vm401_vm2, %v2367_v31  ;;  %v2368_v41 = vadd.f32 %v2531_v60, %v2352_v32 }
 0xd13   : > { %2377 = vst.msk [vmem:[%s4013_s26 + $0x8] sm:$0xff] %vm401_vm2, %v2368_v41 }
 0xd14   : > { %v2321_v44 = vpop.f32.mrb[112].mxu1 }
 0xd15   : > { %v2353_v57 = vadd.f32 %v2321_v44, %v3905_v18  ;;  %v2953_v43 = vpop.f32.mrb[113].mxu1 }
 0xd16   : > { %v2324_v46 = vpop.f32.mrb[114].mxu1 }
 0xd17   : > { %v2369_v58 = vadd.f32 %v2531_v60, %v2353_v57  ;;  %v2354_v26 = vadd.f32 %v2324_v46, %v3908_v37  ;;  %v2954_v42 = vpop.f32.mrb[115].mxu1 }
 0xd19   : > { %2378 = vst.msk [vmem:[%s4013_s26 + $0x10] sm:$0xff] %vm401_vm2, %v2369_v58  ;;  %v2370_v9 = vadd.f32 %v2531_v60, %v2354_v26 }
 0xd1b   : > { %2379 = vst.msk [vmem:[%s4013_s26 + $0x18] sm:$0xff] %vm401_vm2, %v2370_v9 }
 0xd1c   : > { %v2329_v62 = vpop.f32.mrb[116].mxu1 }
 0xd1d   : > { %v2355_v38 = vadd.f32 %v2329_v62, %v3946_v10  ;;  %v2957_v53 = vpop.f32.mrb[117].mxu1 }
 0xd1e   : > { %v2332_v36 = vpop.f32.mrb[118].mxu1 }
 0xd1f   : > { %v2371_v18 = vadd.f32 %v2531_v60, %v2355_v38  ;;  %v2356_v0 = vadd.f32 %v2332_v36, %v3949_v54  ;;  %v2958_v28 = vpop.f32.mrb[119].mxu1 }
 0xd21   : > { %2380 = vst.msk [vmem:[%s4013_s26 + $0x20] sm:$0xff] %vm401_vm2, %v2371_v18  ;;  %v2372_v37 = vadd.f32 %v2531_v60, %v2356_v0 }
 0xd23   : > { %2381 = vst.msk [vmem:[%s4013_s26 + $0x28] sm:$0xff] %vm401_vm2, %v2372_v37 }
 0xd24   : > { %v2337_v5 = vpop.f32.mrb[120].mxu1 }
 0xd25   : > { %v2357_v6 = vadd.f32 %v2337_v5, %v3953_v12  ;;  %v2961_v63 = vpop.f32.mrb[121].mxu1 }
 0xd26   : > { %v2340_v4 = vpop.f32.mrb[122].mxu1 }
 0xd27   : > { %v2373_v10 = vadd.f32 %v2531_v60, %v2357_v6  ;;  %v2358_v11 = vadd.f32 %v2340_v4, %v3956_v24  ;;  %v2962_v59 = vpop.f32.mrb[123].mxu1 }
 0xd29   : > { %2382 = vst.msk [vmem:[%s4013_s26 + $0x30] sm:$0xff] %vm401_vm2, %v2373_v10  ;;  %v2374_v56 = vadd.f32 %v2531_v60, %v2358_v11 }
 0xd2b   : > { %2383 = vst.msk [vmem:[%s4013_s26 + $0x38] sm:$0xff] %vm401_vm2, %v2374_v56 }
 0xd39   : > { %v2345_v54 = vpop.f32.mrb[124].mxu1 }
 0xd3a   : > { %v2359_v14 = vadd.f32 %v2345_v54, %v3960_v1  ;;  %v2965_v48 = vpop.f32.mrb[125].mxu1 }
 0xd3b   : > { %v2348_v15 = vpop.f32.mrb[126].mxu1 }
 0xd3c   : > { %v2375_v49 = vadd.f32 %v2531_v60, %v2359_v14  ;;  %v2966_v39 = vpop.f32.mrb[127].mxu1 }
 0xd3e   : > { %2384 = vst.msk [vmem:[%s4013_s26 + $0x40] sm:$0x1] %vm572_vm1, %v2375_v49 }
 0xd3f PF: > { %s20_s13 = sadd.s32 1, %s3142_s13  }
 0xd40   : > { %p17_p4 = scmp.ge.s32.totalorder %s20_s13, 4  }
 0xd42   :  { %19 = sbr.rel (!%p17_p4) target bundleno = 1 (0x1), region = 93 }

</bundles_post_ra>
